<compile_context>
chip_gen: v7x
topology: tpu7x:2x2x1
jax: 0.10.0
libtpu: 0.0.40
codegen_flags: <defaults>
</compile_context>

<pallas_src>
import functools

import jax
import jax.numpy as jnp
from jax.experimental import pallas as pl
from jax.experimental.pallas import tpu as pltpu

EPS = 1e-5                      # nn.LayerNorm default eps
COMPUTE_DTYPE = jnp.bfloat16    # matmul input dtype (f32 accumulation)
GELU_APPROXIMATE = True         # tanh GELU (EUP) instead of exact erf GELU


# -----------------------------------------------------------------------------
# Kernel helpers
# -----------------------------------------------------------------------------
def _layer_norm(x, gamma, beta):
    mu = jnp.mean(x, axis=-1, keepdims=True)
    var = jnp.mean((x - mu) ** 2, axis=-1, keepdims=True)
    return (x - mu) * jax.lax.rsqrt(var + EPS) * gamma + beta


# -----------------------------------------------------------------------------
# Fused transformer-layer kernel
#   x_ref : (block_b * seq_len, dim)  f32 token rows (residual stream)
#   o_ref : same shape                 (aliased onto x's HBM buffer)
# -----------------------------------------------------------------------------
def transformer_layer_kernel(x_ref,
                             g1_ref, be1_ref, wqkv_ref, wo_ref, bo_ref,
                             g2_ref, be2_ref, w1_ref, b1_ref, w2_ref, b2_ref,
                             o_ref, *, heads, seq_len):
    rows, dim = x_ref.shape
    tb = rows // seq_len          # batch elements in this tile (static)
    d = dim // heads
    cdt = COMPUTE_DTYPE

    x = x_ref[...]                                           # (rows, dim) f32

    # ---------------- PreNorm + Attention + residual ----------------
    xn = _layer_norm(x, g1_ref[0], be1_ref[0]).astype(cdt)
    # NOTE: the softmax scale (dim**-0.5) is pre-folded into the Q columns of
    # wqkv host-side, so no score rescale is needed here.
    qkv = jnp.dot(xn, wqkv_ref[...],
                  preferred_element_type=jnp.float32).astype(cdt)   # (rows, 3*dim)
    qkv3 = qkv.reshape(tb, seq_len, 3 * dim)                 # (tb, n, 3*dim)

    # Per-head attention, batched over the batch tile with single-batch-dim
    # 3-D einsums (proven Mosaic lowering path).  Lane slices below cover the
    # whole tile for a head at once — no per-(batch, head) copies.
    ctx_heads = []
    for h in range(heads):
        qh = qkv3[:, :, h * d:(h + 1) * d]                   # (tb, n, d) bf16
        kh = qkv3[:, :, dim + h * d:dim + (h + 1) * d]
        vh = qkv3[:, :, 2 * dim + h * d:2 * dim + (h + 1) * d]
        s = jnp.einsum('bqd,bkd->bqk', qh, kh,
                       preferred_element_type=jnp.float32)   # (tb, n, n) f32
        s = s - jnp.max(s, axis=-1, keepdims=True)
        e = jnp.exp(s)
        p = e * pl.reciprocal(jnp.sum(e, axis=-1, keepdims=True), approx=True)
        ctx_heads.append(jnp.einsum('bqk,bkd->bqd', p.astype(cdt), vh,
                                    preferred_element_type=jnp.float32))
    ctx = jnp.concatenate(ctx_heads, axis=-1)                # (tb, n, dim) = 'b n (h d)'
    attn_out = ctx.reshape(rows, dim)                        # (rows, dim)

    proj = jnp.dot(attn_out.astype(cdt), wo_ref[...],
                   preferred_element_type=jnp.float32) + bo_ref[0]
    x1 = proj + x                                            # residual, f32

    # ---------------- PreNorm + FeedForward + residual ----------------
    x1n = _layer_norm(x1, g2_ref[0], be2_ref[0]).astype(cdt)
    h1 = jnp.dot(x1n, w1_ref[...],
                 preferred_element_type=jnp.float32) + b1_ref[0]
    h1 = jax.nn.gelu(h1, approximate=GELU_APPROXIMATE)
    h2 = jnp.dot(h1.astype(cdt), w2_ref[...],
                 preferred_element_type=jnp.float32) + b2_ref[0]

    o_ref[...] = h2 + x1


# -----------------------------------------------------------------------------
# VMEM budgeting / tiling heuristics
# -----------------------------------------------------------------------------
_VMEM_LIMIT_CACHE = None


def _vmem_limit_bytes():
    """Per-generation scoped-VMEM request: ~100 MiB on v5e/v6e (128 MiB
    physical), ~48 MiB on v7x (64 MiB physical); safe 48 MiB fallback."""
    global _VMEM_LIMIT_CACHE
    if _VMEM_LIMIT_CACHE is None:
        try:
            cap = int(pltpu.get_tpu_info().vmem_capacity_bytes)
        except Exception:
            cap = 64 * 1024 * 1024
        _VMEM_LIMIT_CACHE = int(min(cap - 16 * 1024 * 1024, 100 * 1024 * 1024))
    return _VMEM_LIMIT_CACHE


def _weight_vmem_bytes(dim, mlp_dim):
    mats = dim * 3 * dim + dim * dim + dim * mlp_dim + mlp_dim * dim   # bf16
    vecs = 4 * dim + 2 * dim + mlp_dim                                  # f32 LN/bias
    return mats * 2 + vecs * 4


def _tile_vmem_bytes(block_b, seq_len, dim, mlp_dim):
    rows = block_b * seq_len
    v = 0
    v += 2 * 2 * rows * dim * 4                 # x in-tile + out-tile, double-buffered
    v += rows * 3 * dim * 6                     # qkv f32 accumulator + bf16 copy
    v += 2 * block_b * seq_len * seq_len * 4    # per-head scores / probs (f32)
    v += rows * dim * 6                         # attention context + bf16 copy
    v += rows * mlp_dim * 6                     # FFN hidden (f32 + bf16 copy)
    v += 4 * rows * dim * 4                     # LN temporaries / residual stream
    return v


def _pick_block_b(b, n, dim, mlp_dim, vmem_limit, *, min_steps=4, target_rows=256):
    """Pick block_b (batch elements per grid step) such that:
       * block_rows = block_b*n is a multiple of 8 or equals the full row count
         (BlockSpec (8,128) sublane rule),
       * all VMEM consumers (activations, scores, FFN hidden, weights) fit in
         ~80% of the requested VMEM limit,
       * the grid keeps up to `min_steps` steps when the batch allows (pipeline
         overlap + both v7x TensorCores), preferring block_rows up to
         `target_rows` so the 256-wide MXU sees full row tiles.
    """
    rows_total = b * n
    budget = int(0.8 * vmem_limit) - _weight_vmem_bytes(dim, mlp_dim)
    cands = []
    for cand in range(1, b + 1):
        if b % cand:
            continue
        block_rows = cand * n
        if block_rows % 8 != 0 and block_rows != rows_total:
            continue
        if _tile_vmem_bytes(cand, n, dim, mlp_dim) > budget:
            continue
        cands.append(cand)
    if not cands:
        # Correctness fallback: smallest block satisfying the shape rule.
        for cand in range(1, b + 1):
            if b % cand == 0 and ((cand * n) % 8 == 0 or cand * n == rows_total):
                return cand
        return b

    def score(c):
        steps = b // c
        rows = c * n
        return (min(steps, min_steps), min(rows, target_rows), rows)

    return max(cands, key=score)


# -----------------------------------------------------------------------------
# Pallas wrappers
# -----------------------------------------------------------------------------
def _weight_spec(shape, single_buffer):
    nd = len(shape)
    idx = lambda i, _nd=nd: (0,) * _nd
    if single_buffer:
        try:
            # Grid-invariant weights: don't double-buffer them (halves weight
            # VMEM, critical on v7x's 64 MiB VMEM).
            return pl.BlockSpec(shape, idx, pipeline_mode=pl.Buffered(1))
        except TypeError:
            pass   # older JAX without pipeline_mode — fall back to default
    return pl.BlockSpec(shape, idx)


def transformer_layer(xr, layer, *, heads, seq_len, block_b, vmem_limit,
                      single_buffer_weights):
    rows, dim = xr.shape
    a, f = layer["attn"], layer["ffn"]
    block_rows = block_b * seq_len
    grid = (rows // block_rows,)

    kernel = functools.partial(transformer_layer_kernel,
                               heads=heads, seq_len=seq_len)
    row_spec = pl.BlockSpec((block_rows, dim), lambda i: (i, 0))

    operands = (xr,
                a["gamma"], a["beta"], a["wqkv_t"], a["wo_t"], a["bo"],
                f["gamma"], f["beta"], f["w1_t"], f["b1"], f["w2_t"], f["b2"])
    in_specs = [row_spec] + [_weight_spec(op.shape, single_buffer_weights)
                             for op in operands[1:]]

    return pl.pallas_call(
        kernel,
        out_shape=jax.ShapeDtypeStruct((rows, dim), xr.dtype),
        grid=grid,
        in_specs=in_specs,
        out_specs=row_spec,
        input_output_aliases={0: 0},     # reuse the residual-stream buffer
        compiler_params=pltpu.CompilerParams(
            dimension_semantics=("parallel",),
            vmem_limit_bytes=vmem_limit),
    )(*operands)


@functools.partial(jax.jit, static_argnames=("heads", "single_buffer_weights"))
def transformer_forward(x, params, *, heads, single_buffer_weights=True):
    b, n, dim = x.shape
    mlp_dim = params[0]["ffn"]["w1_t"].shape[1]
    vmem_limit = _vmem_limit_bytes()
    block_b = _pick_block_b(b, n, dim, mlp_dim, vmem_limit)
    xr = x.reshape(b * n, dim)           # token-row layout (host-side, free)
    for layer in params:
        xr = transformer_layer(xr, layer, heads=heads, seq_len=n,
                               block_b=block_b, vmem_limit=vmem_limit,
                               single_buffer_weights=single_buffer_weights)
    return xr.reshape(b, n, dim)


# -----------------------------------------------------------------------------
# Deterministic parameter init (nn.Linear-style uniform; weights pre-transposed
# to (in, out), softmax scale folded into the Q columns of wqkv, stored bf16;
# biases / LN params stay f32)
# -----------------------------------------------------------------------------
def init_params(key, *, dim, depth, mlp_dim):
    scale = dim ** (-0.5)   # matches PyTorch Attention: self.scale = dim ** -0.5

    def linear(k, fan_in, fan_out, bias=True):
        kw, kb = jax.random.split(k)
        bound = 1.0 / (fan_in ** 0.5)
        w = jax.random.uniform(kw, (fan_in, fan_out), jnp.float32, -bound, bound)
        b = (jax.random.uniform(kb, (1, fan_out), jnp.float32, -bound, bound)
             if bias else None)
        return w, b

    params = []
    for _ in range(depth):
        key, k1, k2, k3, k4 = jax.random.split(key, 5)
        wqkv, _ = linear(k1, dim, 3 * dim, bias=False)     # to_qkv (bias=False)
        wqkv = wqkv.at[:, :dim].multiply(scale)            # fold softmax scale into Q
        wo, bo = linear(k2, dim, dim)                      # to_out
        w1, b1 = linear(k3, dim, mlp_dim)
        w2, b2 = linear(k4, mlp_dim, dim)
        params.append({
            "attn": {"gamma": jnp.ones((1, dim), jnp.float32),
                     "beta": jnp.zeros((1, dim), jnp.float32),
                     "wqkv_t": wqkv.astype(COMPUTE_DTYPE),
                     "wo_t": wo.astype(COMPUTE_DTYPE), "bo": bo},
            "ffn": {"gamma": jnp.ones((1, dim), jnp.float32),
                    "beta": jnp.zeros((1, dim), jnp.float32),
                    "w1_t": w1.astype(COMPUTE_DTYPE), "b1": b1,
                    "w2_t": w2.astype(COMPUTE_DTYPE), "b2": b2},
        })
    return params


# -----------------------------------------------------------------------------
# Pure-JAX reference (same bf16-input / f32-accumulate matmuls, same folded
# softmax scale and GELU variant as the kernel)
# -----------------------------------------------------------------------------
def transformer_reference(x, params, *, heads):
    b, n, dim = x.shape
    d = dim // heads
    cdt = COMPUTE_DTYPE

    def ln(y, g, be):
        mu = jnp.mean(y, -1, keepdims=True)
        var = jnp.mean((y - mu) ** 2, -1, keepdims=True)
        return (y - mu) * jax.lax.rsqrt(var + EPS) * g + be

    for layer in params:
        a, f = layer["attn"], layer["ffn"]
        xn = ln(x, a["gamma"][0], a["beta"][0]).astype(cdt)
        qkv = jnp.einsum('bnd,df->bnf', xn, a["wqkv_t"],
                         preferred_element_type=jnp.float32)
        q, k, v = jnp.split(qkv, 3, axis=-1)
        q = q.reshape(b, n, heads, d).transpose(0, 2, 1, 3).astype(cdt)
        k = k.reshape(b, n, heads, d).transpose(0, 2, 1, 3).astype(cdt)
        v = v.reshape(b, n, heads, d).transpose(0, 2, 1, 3).astype(cdt)
        # NOTE: scale already folded into the Q columns of wqkv_t.
        dots = jnp.einsum('bhid,bhjd->bhij', q, k,
                          preferred_element_type=jnp.float32)
        attn = jax.nn.softmax(dots, axis=-1)
        out = jnp.einsum('bhij,bhjd->bhid', attn.astype(cdt), v,
                         preferred_element_type=jnp.float32)
        out = out.transpose(0, 2, 1, 3).reshape(b, n, dim)
        x = (jnp.einsum('bnd,df->bnf', out.astype(cdt), a["wo_t"],
                        preferred_element_type=jnp.float32) + a["bo"][0]) + x

        xn = ln(x, f["gamma"][0], f["beta"][0]).astype(cdt)
        h1 = jnp.einsum('bnd,dh->bnh', xn, f["w1_t"],
                        preferred_element_type=jnp.float32) + f["b1"][0]
        h1 = jax.nn.gelu(h1, approximate=GELU_APPROXIMATE)
        x = (jnp.einsum('bnh,hd->bnd', h1.astype(cdt), f["w2_t"],
                        preferred_element_type=jnp.float32) + f["b2"][0]) + x
    return x


# -----------------------------------------------------------------------------
if __name__ == "__main__":
    BATCH, SEQ, DIM, HEADS, MLP_DIM, DEPTH = 2, 8, 32, 4, 64, 2

    key = jax.random.PRNGKey(0)
    kx, kp = jax.random.split(key)
    x = jax.random.normal(kx, (BATCH, SEQ, DIM), jnp.float32)
    params = init_params(kp, dim=DIM, depth=DEPTH, mlp_dim=MLP_DIM)

    ref = transformer_reference(x, params, heads=HEADS)

    def run(single_buffer_weights):
        out = transformer_forward(x, params, heads=HEADS,
                                  single_buffer_weights=single_buffer_weights)
        return jax.block_until_ready(out)

    try:
        out = run(True)
    except Exception:
        # Fallback: this JAX build rejected pl.Buffered(1) single-buffered
        # weights -> use the default double-buffered pipeline instead.
        out = run(False)

    assert out.shape == (BATCH, SEQ, DIM)
    max_err = float(jnp.max(jnp.abs(out - ref)))
    # bf16 matmul inputs + approx-reciprocal softmax -> loosened tolerance.
    assert jnp.allclose(out, ref, atol=1e-2, rtol=1e-2), \
        f"mismatch vs reference (max abs err = {max_err})"

    print("KERNEL_OK")
</pallas_src>

<mosaic_0001>
module attributes {stable_mosaic.version = 11 : i64} {
  func.func @transformer_layer_kernel(%arg0: i32, %arg1: memref<8x32xf32, #tpu.memory_space<vmem>>, %arg2: memref<1x32xf32, #tpu.memory_space<vmem>>, %arg3: memref<1x32xf32, #tpu.memory_space<vmem>>, %arg4: memref<32x96xbf16, #tpu.memory_space<vmem>>, %arg5: memref<32x32xbf16, #tpu.memory_space<vmem>>, %arg6: memref<1x32xf32, #tpu.memory_space<vmem>>, %arg7: memref<1x32xf32, #tpu.memory_space<vmem>>, %arg8: memref<1x32xf32, #tpu.memory_space<vmem>>, %arg9: memref<32x64xbf16, #tpu.memory_space<vmem>>, %arg10: memref<1x64xf32, #tpu.memory_space<vmem>>, %arg11: memref<64x32xbf16, #tpu.memory_space<vmem>>, %arg12: memref<1x32xf32, #tpu.memory_space<vmem>>, %arg13: memref<8x32xf32, #tpu.memory_space<vmem>>) attributes {dimension_semantics = [#tpu.dimension_semantics<parallel>], iteration_bounds = array<i64: 2>, scalar_prefetch = 0 : i64, scratch_operands = 0 : i64, tpu.core_type = #tpu.core_type<tc>, window_params = [{transform_indices = @transform_0, window_bounds = array<i64: 8, 32>}, {pipeline_mode = #tpu.pipeline_mode<synchronous>, transform_indices = @transform_1, window_bounds = array<i64: 1, 32>}, {pipeline_mode = #tpu.pipeline_mode<synchronous>, transform_indices = @transform_2, window_bounds = array<i64: 1, 32>}, {pipeline_mode = #tpu.pipeline_mode<synchronous>, transform_indices = @transform_3, window_bounds = array<i64: 32, 96>}, {pipeline_mode = #tpu.pipeline_mode<synchronous>, transform_indices = @transform_4, window_bounds = array<i64: 32, 32>}, {pipeline_mode = #tpu.pipeline_mode<synchronous>, transform_indices = @transform_5, window_bounds = array<i64: 1, 32>}, {pipeline_mode = #tpu.pipeline_mode<synchronous>, transform_indices = @transform_6, window_bounds = array<i64: 1, 32>}, {pipeline_mode = #tpu.pipeline_mode<synchronous>, transform_indices = @transform_7, window_bounds = array<i64: 1, 32>}, {pipeline_mode = #tpu.pipeline_mode<synchronous>, transform_indices = @transform_8, window_bounds = array<i64: 32, 64>}, {pipeline_mode = #tpu.pipeline_mode<synchronous>, transform_indices = @transform_9, window_bounds = array<i64: 1, 64>}, {pipeline_mode = #tpu.pipeline_mode<synchronous>, transform_indices = @transform_10, window_bounds = array<i64: 64, 32>}, {pipeline_mode = #tpu.pipeline_mode<synchronous>, transform_indices = @transform_11, window_bounds = array<i64: 1, 32>}, {transform_indices = @transform_12, window_bounds = array<i64: 8, 32>}]} {
    %c0 = arith.constant 0 : index
    %c0_0 = arith.constant 0 : index
    %0 = vector.load %arg1[%c0, %c0_0] : memref<8x32xf32, #tpu.memory_space<vmem>>, vector<8x32xf32>
    %c0_1 = arith.constant 0 : index
    %c0_2 = arith.constant 0 : index
    %1 = vector.load %arg2[%c0_1, %c0_2] : memref<1x32xf32, #tpu.memory_space<vmem>>, vector<1x32xf32>
    %2 = vector.shape_cast %1 : vector<1x32xf32> to vector<32xf32>
    %c0_3 = arith.constant 0 : index
    %c0_4 = arith.constant 0 : index
    %3 = vector.load %arg3[%c0_3, %c0_4] : memref<1x32xf32, #tpu.memory_space<vmem>>, vector<1x32xf32>
    %4 = vector.shape_cast %3 : vector<1x32xf32> to vector<32xf32>
    %cst = arith.constant dense<0.000000e+00> : vector<8xf32>
    %5 = vector.multi_reduction <add>, %0, %cst [1] : vector<8x32xf32> to vector<8xf32>
    %6 = vector.shape_cast %5 : vector<8xf32> to vector<8x1xf32>
    %cst_5 = arith.constant 3.200000e+01 : f32
    %7 = vector.broadcast %cst_5 : f32 to vector<8x1xf32>
    %8 = arith.divf %6, %7 : vector<8x1xf32>
    %9 = vector.broadcast %8 : vector<8x1xf32> to vector<8x32xf32>
    %10 = arith.subf %0, %9 : vector<8x32xf32>
    %11 = arith.mulf %10, %10 : vector<8x32xf32>
    %cst_6 = arith.constant dense<0.000000e+00> : vector<8xf32>
    %12 = vector.multi_reduction <add>, %11, %cst_6 [1] : vector<8x32xf32> to vector<8xf32>
    %13 = vector.shape_cast %12 : vector<8xf32> to vector<8x1xf32>
    %cst_7 = arith.constant 3.200000e+01 : f32
    %14 = vector.broadcast %cst_7 : f32 to vector<8x1xf32>
    %15 = arith.divf %13, %14 : vector<8x1xf32>
    %16 = vector.broadcast %8 : vector<8x1xf32> to vector<8x32xf32>
    %17 = arith.subf %0, %16 : vector<8x32xf32>
    %cst_8 = arith.constant 9.99999974E-6 : f32
    %18 = vector.broadcast %cst_8 : f32 to vector<8x1xf32>
    %19 = arith.addf %15, %18 : vector<8x1xf32>
    %20 = math.rsqrt %19 : vector<8x1xf32>
    %21 = vector.broadcast %20 : vector<8x1xf32> to vector<8x32xf32>
    %22 = arith.mulf %17, %21 : vector<8x32xf32>
    %23 = vector.shape_cast %2 : vector<32xf32> to vector<1x32xf32>
    %24 = vector.broadcast %23 : vector<1x32xf32> to vector<8x32xf32>
    %25 = arith.mulf %22, %24 : vector<8x32xf32>
    %26 = vector.shape_cast %4 : vector<32xf32> to vector<1x32xf32>
    %27 = vector.broadcast %26 : vector<1x32xf32> to vector<8x32xf32>
    %28 = arith.addf %25, %27 : vector<8x32xf32>
    %29 = arith.truncf %28 : vector<8x32xf32> to vector<8x32xbf16>
    %c0_9 = arith.constant 0 : index
    %c0_10 = arith.constant 0 : index
    %30 = vector.load %arg4[%c0_9, %c0_10] : memref<32x96xbf16, #tpu.memory_space<vmem>>, vector<32x96xbf16>
    %cst_11 = arith.constant dense<0.000000e+00> : vector<8x96xf32>
    %31 = tpu.matmul %29, %30, %cst_11 {dimension_numbers = #tpu.dot_dimension_numbers<[1], [0], [0], [1], [0, 0, 1, 1], [], []>} : vector<8x32xbf16>, vector<32x96xbf16>, vector<8x96xf32> -> vector<8x96xf32>
    %32 = arith.truncf %31 : vector<8x96xf32> to vector<8x96xbf16>
    %33 = vector.shape_cast %32 : vector<8x96xbf16> to vector<1x8x96xbf16>
    %34 = vector.extract_strided_slice %33 {offsets = [0, 0, 0], sizes = [1, 8, 8], strides = [1, 1, 1]} : vector<1x8x96xbf16> to vector<1x8x8xbf16>
    %35 = vector.extract_strided_slice %33 {offsets = [0, 0, 32], sizes = [1, 8, 8], strides = [1, 1, 1]} : vector<1x8x96xbf16> to vector<1x8x8xbf16>
    %36 = vector.extract_strided_slice %33 {offsets = [0, 0, 64], sizes = [1, 8, 8], strides = [1, 1, 1]} : vector<1x8x96xbf16> to vector<1x8x8xbf16>
    "tpu.trace_start"() <{level = 10 : i32, message = "bqd,bkd->bqk"}> : () -> ()
    %cst_12 = arith.constant dense<0.000000e+00> : vector<1x8x8xf32>
    %37 = tpu.matmul %34, %35, %cst_12 {dimension_numbers = #tpu.dot_dimension_numbers<[2], [2], [1], [1], [0, 0, 0, 1, 1, 1], [0], [0]>} : vector<1x8x8xbf16>, vector<1x8x8xbf16>, vector<1x8x8xf32> -> vector<1x8x8xf32>
    "tpu.trace_stop"() : () -> ()
    %cst_13 = arith.constant dense<0xFF800000> : vector<1x8xf32>
    %38 = vector.multi_reduction <maximumf>, %37, %cst_13 [2] : vector<1x8x8xf32> to vector<1x8xf32>
    %39 = vector.shape_cast %38 : vector<1x8xf32> to vector<1x8x1xf32>
    %40 = vector.broadcast %39 : vector<1x8x1xf32> to vector<1x8x8xf32>
    %41 = arith.subf %37, %40 : vector<1x8x8xf32>
    %42 = math.exp %41 : vector<1x8x8xf32>
    %cst_14 = arith.constant dense<0.000000e+00> : vector<1x8xf32>
    %43 = vector.multi_reduction <add>, %42, %cst_14 [2] : vector<1x8x8xf32> to vector<1x8xf32>
    %44 = vector.shape_cast %43 : vector<1x8xf32> to vector<1x8x1xf32>
    %45 = tpu.reciprocal %44 {approx = true} : vector<1x8x1xf32> -> vector<1x8x1xf32>
    %46 = vector.broadcast %45 : vector<1x8x1xf32> to vector<1x8x8xf32>
    %47 = arith.mulf %42, %46 : vector<1x8x8xf32>
    %48 = arith.truncf %47 : vector<1x8x8xf32> to vector<1x8x8xbf16>
    "tpu.trace_start"() <{level = 10 : i32, message = "bqk,bkd->bqd"}> : () -> ()
    %cst_15 = arith.constant dense<0.000000e+00> : vector<1x8x8xf32>
    %49 = tpu.matmul %48, %36, %cst_15 {dimension_numbers = #tpu.dot_dimension_numbers<[2], [1], [1], [2], [0, 0, 0, 1, 1, 2], [0], [0]>} : vector<1x8x8xbf16>, vector<1x8x8xbf16>, vector<1x8x8xf32> -> vector<1x8x8xf32>
    "tpu.trace_stop"() : () -> ()
    %50 = vector.extract_strided_slice %33 {offsets = [0, 0, 8], sizes = [1, 8, 8], strides = [1, 1, 1]} : vector<1x8x96xbf16> to vector<1x8x8xbf16>
    %51 = vector.extract_strided_slice %33 {offsets = [0, 0, 40], sizes = [1, 8, 8], strides = [1, 1, 1]} : vector<1x8x96xbf16> to vector<1x8x8xbf16>
    %52 = vector.extract_strided_slice %33 {offsets = [0, 0, 72], sizes = [1, 8, 8], strides = [1, 1, 1]} : vector<1x8x96xbf16> to vector<1x8x8xbf16>
    "tpu.trace_start"() <{level = 10 : i32, message = "bqd,bkd->bqk"}> : () -> ()
    %cst_16 = arith.constant dense<0.000000e+00> : vector<1x8x8xf32>
    %53 = tpu.matmul %50, %51, %cst_16 {dimension_numbers = #tpu.dot_dimension_numbers<[2], [2], [1], [1], [0, 0, 0, 1, 1, 1], [0], [0]>} : vector<1x8x8xbf16>, vector<1x8x8xbf16>, vector<1x8x8xf32> -> vector<1x8x8xf32>
    "tpu.trace_stop"() : () -> ()
    %cst_17 = arith.constant dense<0xFF800000> : vector<1x8xf32>
    %54 = vector.multi_reduction <maximumf>, %53, %cst_17 [2] : vector<1x8x8xf32> to vector<1x8xf32>
    %55 = vector.shape_cast %54 : vector<1x8xf32> to vector<1x8x1xf32>
    %56 = vector.broadcast %55 : vector<1x8x1xf32> to vector<1x8x8xf32>
    %57 = arith.subf %53, %56 : vector<1x8x8xf32>
    %58 = math.exp %57 : vector<1x8x8xf32>
    %cst_18 = arith.constant dense<0.000000e+00> : vector<1x8xf32>
    %59 = vector.multi_reduction <add>, %58, %cst_18 [2] : vector<1x8x8xf32> to vector<1x8xf32>
    %60 = vector.shape_cast %59 : vector<1x8xf32> to vector<1x8x1xf32>
    %61 = tpu.reciprocal %60 {approx = true} : vector<1x8x1xf32> -> vector<1x8x1xf32>
    %62 = vector.broadcast %61 : vector<1x8x1xf32> to vector<1x8x8xf32>
    %63 = arith.mulf %58, %62 : vector<1x8x8xf32>
    %64 = arith.truncf %63 : vector<1x8x8xf32> to vector<1x8x8xbf16>
    "tpu.trace_start"() <{level = 10 : i32, message = "bqk,bkd->bqd"}> : () -> ()
    %cst_19 = arith.constant dense<0.000000e+00> : vector<1x8x8xf32>
    %65 = tpu.matmul %64, %52, %cst_19 {dimension_numbers = #tpu.dot_dimension_numbers<[2], [1], [1], [2], [0, 0, 0, 1, 1, 2], [0], [0]>} : vector<1x8x8xbf16>, vector<1x8x8xbf16>, vector<1x8x8xf32> -> vector<1x8x8xf32>
    "tpu.trace_stop"() : () -> ()
    %66 = vector.extract_strided_slice %33 {offsets = [0, 0, 16], sizes = [1, 8, 8], strides = [1, 1, 1]} : vector<1x8x96xbf16> to vector<1x8x8xbf16>
    %67 = vector.extract_strided_slice %33 {offsets = [0, 0, 48], sizes = [1, 8, 8], strides = [1, 1, 1]} : vector<1x8x96xbf16> to vector<1x8x8xbf16>
    %68 = vector.extract_strided_slice %33 {offsets = [0, 0, 80], sizes = [1, 8, 8], strides = [1, 1, 1]} : vector<1x8x96xbf16> to vector<1x8x8xbf16>
    "tpu.trace_start"() <{level = 10 : i32, message = "bqd,bkd->bqk"}> : () -> ()
    %cst_20 = arith.constant dense<0.000000e+00> : vector<1x8x8xf32>
    %69 = tpu.matmul %66, %67, %cst_20 {dimension_numbers = #tpu.dot_dimension_numbers<[2], [2], [1], [1], [0, 0, 0, 1, 1, 1], [0], [0]>} : vector<1x8x8xbf16>, vector<1x8x8xbf16>, vector<1x8x8xf32> -> vector<1x8x8xf32>
    "tpu.trace_stop"() : () -> ()
    %cst_21 = arith.constant dense<0xFF800000> : vector<1x8xf32>
    %70 = vector.multi_reduction <maximumf>, %69, %cst_21 [2] : vector<1x8x8xf32> to vector<1x8xf32>
    %71 = vector.shape_cast %70 : vector<1x8xf32> to vector<1x8x1xf32>
    %72 = vector.broadcast %71 : vector<1x8x1xf32> to vector<1x8x8xf32>
    %73 = arith.subf %69, %72 : vector<1x8x8xf32>
    %74 = math.exp %73 : vector<1x8x8xf32>
    %cst_22 = arith.constant dense<0.000000e+00> : vector<1x8xf32>
    %75 = vector.multi_reduction <add>, %74, %cst_22 [2] : vector<1x8x8xf32> to vector<1x8xf32>
    %76 = vector.shape_cast %75 : vector<1x8xf32> to vector<1x8x1xf32>
    %77 = tpu.reciprocal %76 {approx = true} : vector<1x8x1xf32> -> vector<1x8x1xf32>
    %78 = vector.broadcast %77 : vector<1x8x1xf32> to vector<1x8x8xf32>
    %79 = arith.mulf %74, %78 : vector<1x8x8xf32>
    %80 = arith.truncf %79 : vector<1x8x8xf32> to vector<1x8x8xbf16>
    "tpu.trace_start"() <{level = 10 : i32, message = "bqk,bkd->bqd"}> : () -> ()
    %cst_23 = arith.constant dense<0.000000e+00> : vector<1x8x8xf32>
    %81 = tpu.matmul %80, %68, %cst_23 {dimension_numbers = #tpu.dot_dimension_numbers<[2], [1], [1], [2], [0, 0, 0, 1, 1, 2], [0], [0]>} : vector<1x8x8xbf16>, vector<1x8x8xbf16>, vector<1x8x8xf32> -> vector<1x8x8xf32>
    "tpu.trace_stop"() : () -> ()
    %82 = vector.extract_strided_slice %33 {offsets = [0, 0, 24], sizes = [1, 8, 8], strides = [1, 1, 1]} : vector<1x8x96xbf16> to vector<1x8x8xbf16>
    %83 = vector.extract_strided_slice %33 {offsets = [0, 0, 56], sizes = [1, 8, 8], strides = [1, 1, 1]} : vector<1x8x96xbf16> to vector<1x8x8xbf16>
    %84 = vector.extract_strided_slice %33 {offsets = [0, 0, 88], sizes = [1, 8, 8], strides = [1, 1, 1]} : vector<1x8x96xbf16> to vector<1x8x8xbf16>
    "tpu.trace_start"() <{level = 10 : i32, message = "bqd,bkd->bqk"}> : () -> ()
    %cst_24 = arith.constant dense<0.000000e+00> : vector<1x8x8xf32>
    %85 = tpu.matmul %82, %83, %cst_24 {dimension_numbers = #tpu.dot_dimension_numbers<[2], [2], [1], [1], [0, 0, 0, 1, 1, 1], [0], [0]>} : vector<1x8x8xbf16>, vector<1x8x8xbf16>, vector<1x8x8xf32> -> vector<1x8x8xf32>
    "tpu.trace_stop"() : () -> ()
    %cst_25 = arith.constant dense<0xFF800000> : vector<1x8xf32>
    %86 = vector.multi_reduction <maximumf>, %85, %cst_25 [2] : vector<1x8x8xf32> to vector<1x8xf32>
    %87 = vector.shape_cast %86 : vector<1x8xf32> to vector<1x8x1xf32>
    %88 = vector.broadcast %87 : vector<1x8x1xf32> to vector<1x8x8xf32>
    %89 = arith.subf %85, %88 : vector<1x8x8xf32>
    %90 = math.exp %89 : vector<1x8x8xf32>
    %cst_26 = arith.constant dense<0.000000e+00> : vector<1x8xf32>
    %91 = vector.multi_reduction <add>, %90, %cst_26 [2] : vector<1x8x8xf32> to vector<1x8xf32>
    %92 = vector.shape_cast %91 : vector<1x8xf32> to vector<1x8x1xf32>
    %93 = tpu.reciprocal %92 {approx = true} : vector<1x8x1xf32> -> vector<1x8x1xf32>
    %94 = vector.broadcast %93 : vector<1x8x1xf32> to vector<1x8x8xf32>
    %95 = arith.mulf %90, %94 : vector<1x8x8xf32>
    %96 = arith.truncf %95 : vector<1x8x8xf32> to vector<1x8x8xbf16>
    "tpu.trace_start"() <{level = 10 : i32, message = "bqk,bkd->bqd"}> : () -> ()
    %cst_27 = arith.constant dense<0.000000e+00> : vector<1x8x8xf32>
    %97 = tpu.matmul %96, %84, %cst_27 {dimension_numbers = #tpu.dot_dimension_numbers<[2], [1], [1], [2], [0, 0, 0, 1, 1, 2], [0], [0]>} : vector<1x8x8xbf16>, vector<1x8x8xbf16>, vector<1x8x8xf32> -> vector<1x8x8xf32>
    "tpu.trace_stop"() : () -> ()
    %98 = tpu.concatenate %49, %65, %81, %97 in 2 : vector<1x8x8xf32>, vector<1x8x8xf32>, vector<1x8x8xf32>, vector<1x8x8xf32> -> vector<1x8x32xf32>
    %99 = vector.shape_cast %98 : vector<1x8x32xf32> to vector<8x32xf32>
    %100 = arith.truncf %99 : vector<8x32xf32> to vector<8x32xbf16>
    %c0_28 = arith.constant 0 : index
    %c0_29 = arith.constant 0 : index
    %101 = vector.load %arg5[%c0_28, %c0_29] : memref<32x32xbf16, #tpu.memory_space<vmem>>, vector<32x32xbf16>
    %cst_30 = arith.constant dense<0.000000e+00> : vector<8x32xf32>
    %102 = tpu.matmul %100, %101, %cst_30 {dimension_numbers = #tpu.dot_dimension_numbers<[1], [0], [0], [1], [0, 0, 1, 1], [], []>} : vector<8x32xbf16>, vector<32x32xbf16>, vector<8x32xf32> -> vector<8x32xf32>
    %c0_31 = arith.constant 0 : index
    %c0_32 = arith.constant 0 : index
    %103 = vector.load %arg6[%c0_31, %c0_32] : memref<1x32xf32, #tpu.memory_space<vmem>>, vector<1x32xf32>
    %104 = vector.shape_cast %103 : vector<1x32xf32> to vector<32xf32>
    %105 = vector.shape_cast %104 : vector<32xf32> to vector<1x32xf32>
    %106 = vector.broadcast %105 : vector<1x32xf32> to vector<8x32xf32>
    %107 = arith.addf %102, %106 : vector<8x32xf32>
    %108 = arith.addf %107, %0 : vector<8x32xf32>
    %c0_33 = arith.constant 0 : index
    %c0_34 = arith.constant 0 : index
    %109 = vector.load %arg7[%c0_33, %c0_34] : memref<1x32xf32, #tpu.memory_space<vmem>>, vector<1x32xf32>
    %110 = vector.shape_cast %109 : vector<1x32xf32> to vector<32xf32>
    %c0_35 = arith.constant 0 : index
    %c0_36 = arith.constant 0 : index
    %111 = vector.load %arg8[%c0_35, %c0_36] : memref<1x32xf32, #tpu.memory_space<vmem>>, vector<1x32xf32>
    %112 = vector.shape_cast %111 : vector<1x32xf32> to vector<32xf32>
    %cst_37 = arith.constant dense<0.000000e+00> : vector<8xf32>
    %113 = vector.multi_reduction <add>, %108, %cst_37 [1] : vector<8x32xf32> to vector<8xf32>
    %114 = vector.shape_cast %113 : vector<8xf32> to vector<8x1xf32>
    %cst_38 = arith.constant 3.200000e+01 : f32
    %115 = vector.broadcast %cst_38 : f32 to vector<8x1xf32>
    %116 = arith.divf %114, %115 : vector<8x1xf32>
    %117 = vector.broadcast %116 : vector<8x1xf32> to vector<8x32xf32>
    %118 = arith.subf %108, %117 : vector<8x32xf32>
    %119 = arith.mulf %118, %118 : vector<8x32xf32>
    %cst_39 = arith.constant dense<0.000000e+00> : vector<8xf32>
    %120 = vector.multi_reduction <add>, %119, %cst_39 [1] : vector<8x32xf32> to vector<8xf32>
    %121 = vector.shape_cast %120 : vector<8xf32> to vector<8x1xf32>
    %cst_40 = arith.constant 3.200000e+01 : f32
    %122 = vector.broadcast %cst_40 : f32 to vector<8x1xf32>
    %123 = arith.divf %121, %122 : vector<8x1xf32>
    %124 = vector.broadcast %116 : vector<8x1xf32> to vector<8x32xf32>
    %125 = arith.subf %108, %124 : vector<8x32xf32>
    %cst_41 = arith.constant 9.99999974E-6 : f32
    %126 = vector.broadcast %cst_41 : f32 to vector<8x1xf32>
    %127 = arith.addf %123, %126 : vector<8x1xf32>
    %128 = math.rsqrt %127 : vector<8x1xf32>
    %129 = vector.broadcast %128 : vector<8x1xf32> to vector<8x32xf32>
    %130 = arith.mulf %125, %129 : vector<8x32xf32>
    %131 = vector.shape_cast %110 : vector<32xf32> to vector<1x32xf32>
    %132 = vector.broadcast %131 : vector<1x32xf32> to vector<8x32xf32>
    %133 = arith.mulf %130, %132 : vector<8x32xf32>
    %134 = vector.shape_cast %112 : vector<32xf32> to vector<1x32xf32>
    %135 = vector.broadcast %134 : vector<1x32xf32> to vector<8x32xf32>
    %136 = arith.addf %133, %135 : vector<8x32xf32>
    %137 = arith.truncf %136 : vector<8x32xf32> to vector<8x32xbf16>
    %c0_42 = arith.constant 0 : index
    %c0_43 = arith.constant 0 : index
    %138 = vector.load %arg9[%c0_42, %c0_43] : memref<32x64xbf16, #tpu.memory_space<vmem>>, vector<32x64xbf16>
    %cst_44 = arith.constant dense<0.000000e+00> : vector<8x64xf32>
    %139 = tpu.matmul %137, %138, %cst_44 {dimension_numbers = #tpu.dot_dimension_numbers<[1], [0], [0], [1], [0, 0, 1, 1], [], []>} : vector<8x32xbf16>, vector<32x64xbf16>, vector<8x64xf32> -> vector<8x64xf32>
    %c0_45 = arith.constant 0 : index
    %c0_46 = arith.constant 0 : index
    %140 = vector.load %arg10[%c0_45, %c0_46] : memref<1x64xf32, #tpu.memory_space<vmem>>, vector<1x64xf32>
    %141 = vector.shape_cast %140 : vector<1x64xf32> to vector<64xf32>
    %142 = vector.shape_cast %141 : vector<64xf32> to vector<1x64xf32>
    %143 = vector.broadcast %142 : vector<1x64xf32> to vector<8x64xf32>
    %144 = arith.addf %139, %143 : vector<8x64xf32>
    %145 = arith.mulf %144, %144 : vector<8x64xf32>
    %146 = arith.mulf %144, %145 : vector<8x64xf32>
    %cst_47 = arith.constant 4.471500e-02 : f32
    %147 = vector.broadcast %cst_47 : f32 to vector<8x64xf32>
    %148 = arith.mulf %147, %146 : vector<8x64xf32>
    %149 = arith.addf %144, %148 : vector<8x64xf32>
    %cst_48 = arith.constant 0.797884583 : f32
    %150 = vector.broadcast %cst_48 : f32 to vector<8x64xf32>
    %151 = arith.mulf %150, %149 : vector<8x64xf32>
    %152 = math.tanh %151 : vector<8x64xf32>
    %cst_49 = arith.constant 1.000000e+00 : f32
    %153 = vector.broadcast %cst_49 : f32 to vector<8x64xf32>
    %154 = arith.addf %153, %152 : vector<8x64xf32>
    %cst_50 = arith.constant 5.000000e-01 : f32
    %155 = vector.broadcast %cst_50 : f32 to vector<8x64xf32>
    %156 = arith.mulf %155, %154 : vector<8x64xf32>
    %157 = arith.mulf %144, %156 : vector<8x64xf32>
    %158 = arith.truncf %157 : vector<8x64xf32> to vector<8x64xbf16>
    %c0_51 = arith.constant 0 : index
    %c0_52 = arith.constant 0 : index
    %159 = vector.load %arg11[%c0_51, %c0_52] : memref<64x32xbf16, #tpu.memory_space<vmem>>, vector<64x32xbf16>
    %cst_53 = arith.constant dense<0.000000e+00> : vector<8x32xf32>
    %160 = tpu.matmul %158, %159, %cst_53 {dimension_numbers = #tpu.dot_dimension_numbers<[1], [0], [0], [1], [0, 0, 1, 1], [], []>} : vector<8x64xbf16>, vector<64x32xbf16>, vector<8x32xf32> -> vector<8x32xf32>
    %c0_54 = arith.constant 0 : index
    %c0_55 = arith.constant 0 : index
    %161 = vector.load %arg12[%c0_54, %c0_55] : memref<1x32xf32, #tpu.memory_space<vmem>>, vector<1x32xf32>
    %162 = vector.shape_cast %161 : vector<1x32xf32> to vector<32xf32>
    %163 = vector.shape_cast %162 : vector<32xf32> to vector<1x32xf32>
    %164 = vector.broadcast %163 : vector<1x32xf32> to vector<8x32xf32>
    %165 = arith.addf %160, %164 : vector<8x32xf32>
    %166 = arith.addf %165, %108 : vector<8x32xf32>
    %c0_56 = arith.constant 0 : index
    %c0_57 = arith.constant 0 : index
    %167 = vector.load %arg13[%c0_56, %c0_57] : memref<8x32xf32, #tpu.memory_space<vmem>>, vector<8x32xf32>
    tpu.vector_store %arg13[%c0_56, %c0_57], %166 {strides = array<i32>} : memref<8x32xf32, #tpu.memory_space<vmem>>, vector<8x32xf32>,
    return
  }
  func.func @transform_0(%arg0: i32) -> (i32, i32) {
    %c0_i32 = arith.constant 0 : i32
    %c0_i32_0 = arith.constant 0 : i32
    return %arg0, %c0_i32 : i32, i32
  }
  func.func @transform_1(%arg0: i32) -> (i32, i32) {
    %c0_i32 = arith.constant 0 : i32
    %c0_i32_0 = arith.constant 0 : i32
    %c0_i32_1 = arith.constant 0 : i32
    return %c0_i32, %c0_i32_0 : i32, i32
  }
  func.func @transform_2(%arg0: i32) -> (i32, i32) {
    %c0_i32 = arith.constant 0 : i32
    %c0_i32_0 = arith.constant 0 : i32
    %c0_i32_1 = arith.constant 0 : i32
    return %c0_i32, %c0_i32_0 : i32, i32
  }
  func.func @transform_3(%arg0: i32) -> (i32, i32) {
    %c0_i32 = arith.constant 0 : i32
    %c0_i32_0 = arith.constant 0 : i32
    %c0_i32_1 = arith.constant 0 : i32
    return %c0_i32, %c0_i32_0 : i32, i32
  }
  func.func @transform_4(%arg0: i32) -> (i32, i32) {
    %c0_i32 = arith.constant 0 : i32
    %c0_i32_0 = arith.constant 0 : i32
    %c0_i32_1 = arith.constant 0 : i32
    return %c0_i32, %c0_i32_0 : i32, i32
  }
  func.func @transform_5(%arg0: i32) -> (i32, i32) {
    %c0_i32 = arith.constant 0 : i32
    %c0_i32_0 = arith.constant 0 : i32
    %c0_i32_1 = arith.constant 0 : i32
    return %c0_i32, %c0_i32_0 : i32, i32
  }
  func.func @transform_6(%arg0: i32) -> (i32, i32) {
    %c0_i32 = arith.constant 0 : i32
    %c0_i32_0 = arith.constant 0 : i32
    %c0_i32_1 = arith.constant 0 : i32
    return %c0_i32, %c0_i32_0 : i32, i32
  }
  func.func @transform_7(%arg0: i32) -> (i32, i32) {
    %c0_i32 = arith.constant 0 : i32
    %c0_i32_0 = arith.constant 0 : i32
    %c0_i32_1 = arith.constant 0 : i32
    return %c0_i32, %c0_i32_0 : i32, i32
  }
  func.func @transform_8(%arg0: i32) -> (i32, i32) {
    %c0_i32 = arith.constant 0 : i32
    %c0_i32_0 = arith.constant 0 : i32
    %c0_i32_1 = arith.constant 0 : i32
    return %c0_i32, %c0_i32_0 : i32, i32
  }
  func.func @transform_9(%arg0: i32) -> (i32, i32) {
    %c0_i32 = arith.constant 0 : i32
    %c0_i32_0 = arith.constant 0 : i32
    %c0_i32_1 = arith.constant 0 : i32
    return %c0_i32, %c0_i32_0 : i32, i32
  }
  func.func @transform_10(%arg0: i32) -> (i32, i32) {
    %c0_i32 = arith.constant 0 : i32
    %c0_i32_0 = arith.constant 0 : i32
    %c0_i32_1 = arith.constant 0 : i32
    return %c0_i32, %c0_i32_0 : i32, i32
  }
  func.func @transform_11(%arg0: i32) -> (i32, i32) {
    %c0_i32 = arith.constant 0 : i32
    %c0_i32_0 = arith.constant 0 : i32
    %c0_i32_1 = arith.constant 0 : i32
    return %c0_i32, %c0_i32_0 : i32, i32
  }
  func.func @transform_12(%arg0: i32) -> (i32, i32) {
    %c0_i32 = arith.constant 0 : i32
    %c0_i32_0 = arith.constant 0 : i32
    return %arg0, %c0_i32 : i32, i32
  }
}

module attributes {stable_mosaic.version = 11 : i64} {
  func.func @transformer_layer_kernel(%arg0: i32, %arg1: memref<8x32xf32, #tpu.memory_space<vmem>>, %arg2: memref<1x32xf32, #tpu.memory_space<vmem>>, %arg3: memref<1x32xf32, #tpu.memory_space<vmem>>, %arg4: memref<32x96xbf16, #tpu.memory_space<vmem>>, %arg5: memref<32x32xbf16, #tpu.memory_space<vmem>>, %arg6: memref<1x32xf32, #tpu.memory_space<vmem>>, %arg7: memref<1x32xf32, #tpu.memory_space<vmem>>, %arg8: memref<1x32xf32, #tpu.memory_space<vmem>>, %arg9: memref<32x64xbf16, #tpu.memory_space<vmem>>, %arg10: memref<1x64xf32, #tpu.memory_space<vmem>>, %arg11: memref<64x32xbf16, #tpu.memory_space<vmem>>, %arg12: memref<1x32xf32, #tpu.memory_space<vmem>>, %arg13: memref<8x32xf32, #tpu.memory_space<vmem>>) attributes {dimension_semantics = [#tpu.dimension_semantics<parallel>], iteration_bounds = array<i64: 2>, scalar_prefetch = 0 : i64, scratch_operands = 0 : i64, tpu.core_type = #tpu.core_type<tc>, window_params = [{transform_indices = @transform_0, window_bounds = array<i64: 8, 32>}, {pipeline_mode = #tpu.pipeline_mode<synchronous>, transform_indices = @transform_1, window_bounds = array<i64: 1, 32>}, {pipeline_mode = #tpu.pipeline_mode<synchronous>, transform_indices = @transform_2, window_bounds = array<i64: 1, 32>}, {pipeline_mode = #tpu.pipeline_mode<synchronous>, transform_indices = @transform_3, window_bounds = array<i64: 32, 96>}, {pipeline_mode = #tpu.pipeline_mode<synchronous>, transform_indices = @transform_4, window_bounds = array<i64: 32, 32>}, {pipeline_mode = #tpu.pipeline_mode<synchronous>, transform_indices = @transform_5, window_bounds = array<i64: 1, 32>}, {pipeline_mode = #tpu.pipeline_mode<synchronous>, transform_indices = @transform_6, window_bounds = array<i64: 1, 32>}, {pipeline_mode = #tpu.pipeline_mode<synchronous>, transform_indices = @transform_7, window_bounds = array<i64: 1, 32>}, {pipeline_mode = #tpu.pipeline_mode<synchronous>, transform_indices = @transform_8, window_bounds = array<i64: 32, 64>}, {pipeline_mode = #tpu.pipeline_mode<synchronous>, transform_indices = @transform_9, window_bounds = array<i64: 1, 64>}, {pipeline_mode = #tpu.pipeline_mode<synchronous>, transform_indices = @transform_10, window_bounds = array<i64: 64, 32>}, {pipeline_mode = #tpu.pipeline_mode<synchronous>, transform_indices = @transform_11, window_bounds = array<i64: 1, 32>}, {transform_indices = @transform_12, window_bounds = array<i64: 8, 32>}]} {
    %c0 = arith.constant 0 : index
    %c0_0 = arith.constant 0 : index
    %0 = vector.load %arg1[%c0, %c0_0] : memref<8x32xf32, #tpu.memory_space<vmem>>, vector<8x32xf32>
    %c0_1 = arith.constant 0 : index
    %c0_2 = arith.constant 0 : index
    %1 = vector.load %arg2[%c0_1, %c0_2] : memref<1x32xf32, #tpu.memory_space<vmem>>, vector<1x32xf32>
    %2 = vector.shape_cast %1 : vector<1x32xf32> to vector<32xf32>
    %c0_3 = arith.constant 0 : index
    %c0_4 = arith.constant 0 : index
    %3 = vector.load %arg3[%c0_3, %c0_4] : memref<1x32xf32, #tpu.memory_space<vmem>>, vector<1x32xf32>
    %4 = vector.shape_cast %3 : vector<1x32xf32> to vector<32xf32>
    %cst = arith.constant dense<0.000000e+00> : vector<8xf32>
    %5 = vector.multi_reduction <add>, %0, %cst [1] : vector<8x32xf32> to vector<8xf32>
    %6 = vector.shape_cast %5 : vector<8xf32> to vector<8x1xf32>
    %cst_5 = arith.constant 3.200000e+01 : f32
    %7 = vector.broadcast %cst_5 : f32 to vector<8x1xf32>
    %8 = arith.divf %6, %7 : vector<8x1xf32>
    %9 = vector.broadcast %8 : vector<8x1xf32> to vector<8x32xf32>
    %10 = arith.subf %0, %9 : vector<8x32xf32>
    %11 = arith.mulf %10, %10 : vector<8x32xf32>
    %cst_6 = arith.constant dense<0.000000e+00> : vector<8xf32>
    %12 = vector.multi_reduction <add>, %11, %cst_6 [1] : vector<8x32xf32> to vector<8xf32>
    %13 = vector.shape_cast %12 : vector<8xf32> to vector<8x1xf32>
    %cst_7 = arith.constant 3.200000e+01 : f32
    %14 = vector.broadcast %cst_7 : f32 to vector<8x1xf32>
    %15 = arith.divf %13, %14 : vector<8x1xf32>
    %16 = vector.broadcast %8 : vector<8x1xf32> to vector<8x32xf32>
    %17 = arith.subf %0, %16 : vector<8x32xf32>
    %cst_8 = arith.constant 9.99999974E-6 : f32
    %18 = vector.broadcast %cst_8 : f32 to vector<8x1xf32>
    %19 = arith.addf %15, %18 : vector<8x1xf32>
    %20 = math.rsqrt %19 : vector<8x1xf32>
    %21 = vector.broadcast %20 : vector<8x1xf32> to vector<8x32xf32>
    %22 = arith.mulf %17, %21 : vector<8x32xf32>
    %23 = vector.shape_cast %2 : vector<32xf32> to vector<1x32xf32>
    %24 = vector.broadcast %23 : vector<1x32xf32> to vector<8x32xf32>
    %25 = arith.mulf %22, %24 : vector<8x32xf32>
    %26 = vector.shape_cast %4 : vector<32xf32> to vector<1x32xf32>
    %27 = vector.broadcast %26 : vector<1x32xf32> to vector<8x32xf32>
    %28 = arith.addf %25, %27 : vector<8x32xf32>
    %29 = arith.truncf %28 : vector<8x32xf32> to vector<8x32xbf16>
    %c0_9 = arith.constant 0 : index
    %c0_10 = arith.constant 0 : index
    %30 = vector.load %arg4[%c0_9, %c0_10] : memref<32x96xbf16, #tpu.memory_space<vmem>>, vector<32x96xbf16>
    %cst_11 = arith.constant dense<0.000000e+00> : vector<8x96xf32>
    %31 = tpu.matmul %29, %30, %cst_11 {dimension_numbers = #tpu.dot_dimension_numbers<[1], [0], [0], [1], [0, 0, 1, 1], [], []>} : vector<8x32xbf16>, vector<32x96xbf16>, vector<8x96xf32> -> vector<8x96xf32>
    %32 = arith.truncf %31 : vector<8x96xf32> to vector<8x96xbf16>
    %33 = vector.shape_cast %32 : vector<8x96xbf16> to vector<1x8x96xbf16>
    %34 = vector.extract_strided_slice %33 {offsets = [0, 0, 0], sizes = [1, 8, 8], strides = [1, 1, 1]} : vector<1x8x96xbf16> to vector<1x8x8xbf16>
    %35 = vector.extract_strided_slice %33 {offsets = [0, 0, 32], sizes = [1, 8, 8], strides = [1, 1, 1]} : vector<1x8x96xbf16> to vector<1x8x8xbf16>
    %36 = vector.extract_strided_slice %33 {offsets = [0, 0, 64], sizes = [1, 8, 8], strides = [1, 1, 1]} : vector<1x8x96xbf16> to vector<1x8x8xbf16>
    "tpu.trace_start"() <{level = 10 : i32, message = "bqd,bkd->bqk"}> : () -> ()
    %cst_12 = arith.constant dense<0.000000e+00> : vector<1x8x8xf32>
    %37 = tpu.matmul %34, %35, %cst_12 {dimension_numbers = #tpu.dot_dimension_numbers<[2], [2], [1], [1], [0, 0, 0, 1, 1, 1], [0], [0]>} : vector<1x8x8xbf16>, vector<1x8x8xbf16>, vector<1x8x8xf32> -> vector<1x8x8xf32>
    "tpu.trace_stop"() : () -> ()
    %cst_13 = arith.constant dense<0xFF800000> : vector<1x8xf32>
    %38 = vector.multi_reduction <maximumf>, %37, %cst_13 [2] : vector<1x8x8xf32> to vector<1x8xf32>
    %39 = vector.shape_cast %38 : vector<1x8xf32> to vector<1x8x1xf32>
    %40 = vector.broadcast %39 : vector<1x8x1xf32> to vector<1x8x8xf32>
    %41 = arith.subf %37, %40 : vector<1x8x8xf32>
    %42 = math.exp %41 : vector<1x8x8xf32>
    %cst_14 = arith.constant dense<0.000000e+00> : vector<1x8xf32>
    %43 = vector.multi_reduction <add>, %42, %cst_14 [2] : vector<1x8x8xf32> to vector<1x8xf32>
    %44 = vector.shape_cast %43 : vector<1x8xf32> to vector<1x8x1xf32>
    %45 = tpu.reciprocal %44 {approx = true} : vector<1x8x1xf32> -> vector<1x8x1xf32>
    %46 = vector.broadcast %45 : vector<1x8x1xf32> to vector<1x8x8xf32>
    %47 = arith.mulf %42, %46 : vector<1x8x8xf32>
    %48 = arith.truncf %47 : vector<1x8x8xf32> to vector<1x8x8xbf16>
    "tpu.trace_start"() <{level = 10 : i32, message = "bqk,bkd->bqd"}> : () -> ()
    %cst_15 = arith.constant dense<0.000000e+00> : vector<1x8x8xf32>
    %49 = tpu.matmul %48, %36, %cst_15 {dimension_numbers = #tpu.dot_dimension_numbers<[2], [1], [1], [2], [0, 0, 0, 1, 1, 2], [0], [0]>} : vector<1x8x8xbf16>, vector<1x8x8xbf16>, vector<1x8x8xf32> -> vector<1x8x8xf32>
    "tpu.trace_stop"() : () -> ()
    %50 = vector.extract_strided_slice %33 {offsets = [0, 0, 8], sizes = [1, 8, 8], strides = [1, 1, 1]} : vector<1x8x96xbf16> to vector<1x8x8xbf16>
    %51 = vector.extract_strided_slice %33 {offsets = [0, 0, 40], sizes = [1, 8, 8], strides = [1, 1, 1]} : vector<1x8x96xbf16> to vector<1x8x8xbf16>
    %52 = vector.extract_strided_slice %33 {offsets = [0, 0, 72], sizes = [1, 8, 8], strides = [1, 1, 1]} : vector<1x8x96xbf16> to vector<1x8x8xbf16>
    "tpu.trace_start"() <{level = 10 : i32, message = "bqd,bkd->bqk"}> : () -> ()
    %cst_16 = arith.constant dense<0.000000e+00> : vector<1x8x8xf32>
    %53 = tpu.matmul %50, %51, %cst_16 {dimension_numbers = #tpu.dot_dimension_numbers<[2], [2], [1], [1], [0, 0, 0, 1, 1, 1], [0], [0]>} : vector<1x8x8xbf16>, vector<1x8x8xbf16>, vector<1x8x8xf32> -> vector<1x8x8xf32>
    "tpu.trace_stop"() : () -> ()
    %cst_17 = arith.constant dense<0xFF800000> : vector<1x8xf32>
    %54 = vector.multi_reduction <maximumf>, %53, %cst_17 [2] : vector<1x8x8xf32> to vector<1x8xf32>
    %55 = vector.shape_cast %54 : vector<1x8xf32> to vector<1x8x1xf32>
    %56 = vector.broadcast %55 : vector<1x8x1xf32> to vector<1x8x8xf32>
    %57 = arith.subf %53, %56 : vector<1x8x8xf32>
    %58 = math.exp %57 : vector<1x8x8xf32>
    %cst_18 = arith.constant dense<0.000000e+00> : vector<1x8xf32>
    %59 = vector.multi_reduction <add>, %58, %cst_18 [2] : vector<1x8x8xf32> to vector<1x8xf32>
    %60 = vector.shape_cast %59 : vector<1x8xf32> to vector<1x8x1xf32>
    %61 = tpu.reciprocal %60 {approx = true} : vector<1x8x1xf32> -> vector<1x8x1xf32>
    %62 = vector.broadcast %61 : vector<1x8x1xf32> to vector<1x8x8xf32>
    %63 = arith.mulf %58, %62 : vector<1x8x8xf32>
    %64 = arith.truncf %63 : vector<1x8x8xf32> to vector<1x8x8xbf16>
    "tpu.trace_start"() <{level = 10 : i32, message = "bqk,bkd->bqd"}> : () -> ()
    %cst_19 = arith.constant dense<0.000000e+00> : vector<1x8x8xf32>
    %65 = tpu.matmul %64, %52, %cst_19 {dimension_numbers = #tpu.dot_dimension_numbers<[2], [1], [1], [2], [0, 0, 0, 1, 1, 2], [0], [0]>} : vector<1x8x8xbf16>, vector<1x8x8xbf16>, vector<1x8x8xf32> -> vector<1x8x8xf32>
    "tpu.trace_stop"() : () -> ()
    %66 = vector.extract_strided_slice %33 {offsets = [0, 0, 16], sizes = [1, 8, 8], strides = [1, 1, 1]} : vector<1x8x96xbf16> to vector<1x8x8xbf16>
    %67 = vector.extract_strided_slice %33 {offsets = [0, 0, 48], sizes = [1, 8, 8], strides = [1, 1, 1]} : vector<1x8x96xbf16> to vector<1x8x8xbf16>
    %68 = vector.extract_strided_slice %33 {offsets = [0, 0, 80], sizes = [1, 8, 8], strides = [1, 1, 1]} : vector<1x8x96xbf16> to vector<1x8x8xbf16>
    "tpu.trace_start"() <{level = 10 : i32, message = "bqd,bkd->bqk"}> : () -> ()
    %cst_20 = arith.constant dense<0.000000e+00> : vector<1x8x8xf32>
    %69 = tpu.matmul %66, %67, %cst_20 {dimension_numbers = #tpu.dot_dimension_numbers<[2], [2], [1], [1], [0, 0, 0, 1, 1, 1], [0], [0]>} : vector<1x8x8xbf16>, vector<1x8x8xbf16>, vector<1x8x8xf32> -> vector<1x8x8xf32>
    "tpu.trace_stop"() : () -> ()
    %cst_21 = arith.constant dense<0xFF800000> : vector<1x8xf32>
    %70 = vector.multi_reduction <maximumf>, %69, %cst_21 [2] : vector<1x8x8xf32> to vector<1x8xf32>
    %71 = vector.shape_cast %70 : vector<1x8xf32> to vector<1x8x1xf32>
    %72 = vector.broadcast %71 : vector<1x8x1xf32> to vector<1x8x8xf32>
    %73 = arith.subf %69, %72 : vector<1x8x8xf32>
    %74 = math.exp %73 : vector<1x8x8xf32>
    %cst_22 = arith.constant dense<0.000000e+00> : vector<1x8xf32>
    %75 = vector.multi_reduction <add>, %74, %cst_22 [2] : vector<1x8x8xf32> to vector<1x8xf32>
    %76 = vector.shape_cast %75 : vector<1x8xf32> to vector<1x8x1xf32>
    %77 = tpu.reciprocal %76 {approx = true} : vector<1x8x1xf32> -> vector<1x8x1xf32>
    %78 = vector.broadcast %77 : vector<1x8x1xf32> to vector<1x8x8xf32>
    %79 = arith.mulf %74, %78 : vector<1x8x8xf32>
    %80 = arith.truncf %79 : vector<1x8x8xf32> to vector<1x8x8xbf16>
    "tpu.trace_start"() <{level = 10 : i32, message = "bqk,bkd->bqd"}> : () -> ()
    %cst_23 = arith.constant dense<0.000000e+00> : vector<1x8x8xf32>
    %81 = tpu.matmul %80, %68, %cst_23 {dimension_numbers = #tpu.dot_dimension_numbers<[2], [1], [1], [2], [0, 0, 0, 1, 1, 2], [0], [0]>} : vector<1x8x8xbf16>, vector<1x8x8xbf16>, vector<1x8x8xf32> -> vector<1x8x8xf32>
    "tpu.trace_stop"() : () -> ()
    %82 = vector.extract_strided_slice %33 {offsets = [0, 0, 24], sizes = [1, 8, 8], strides = [1, 1, 1]} : vector<1x8x96xbf16> to vector<1x8x8xbf16>
    %83 = vector.extract_strided_slice %33 {offsets = [0, 0, 56], sizes = [1, 8, 8], strides = [1, 1, 1]} : vector<1x8x96xbf16> to vector<1x8x8xbf16>
    %84 = vector.extract_strided_slice %33 {offsets = [0, 0, 88], sizes = [1, 8, 8], strides = [1, 1, 1]} : vector<1x8x96xbf16> to vector<1x8x8xbf16>
    "tpu.trace_start"() <{level = 10 : i32, message = "bqd,bkd->bqk"}> : () -> ()
    %cst_24 = arith.constant dense<0.000000e+00> : vector<1x8x8xf32>
    %85 = tpu.matmul %82, %83, %cst_24 {dimension_numbers = #tpu.dot_dimension_numbers<[2], [2], [1], [1], [0, 0, 0, 1, 1, 1], [0], [0]>} : vector<1x8x8xbf16>, vector<1x8x8xbf16>, vector<1x8x8xf32> -> vector<1x8x8xf32>
    "tpu.trace_stop"() : () -> ()
    %cst_25 = arith.constant dense<0xFF800000> : vector<1x8xf32>
    %86 = vector.multi_reduction <maximumf>, %85, %cst_25 [2] : vector<1x8x8xf32> to vector<1x8xf32>
    %87 = vector.shape_cast %86 : vector<1x8xf32> to vector<1x8x1xf32>
    %88 = vector.broadcast %87 : vector<1x8x1xf32> to vector<1x8x8xf32>
    %89 = arith.subf %85, %88 : vector<1x8x8xf32>
    %90 = math.exp %89 : vector<1x8x8xf32>
    %cst_26 = arith.constant dense<0.000000e+00> : vector<1x8xf32>
    %91 = vector.multi_reduction <add>, %90, %cst_26 [2] : vector<1x8x8xf32> to vector<1x8xf32>
    %92 = vector.shape_cast %91 : vector<1x8xf32> to vector<1x8x1xf32>
    %93 = tpu.reciprocal %92 {approx = true} : vector<1x8x1xf32> -> vector<1x8x1xf32>
    %94 = vector.broadcast %93 : vector<1x8x1xf32> to vector<1x8x8xf32>
    %95 = arith.mulf %90, %94 : vector<1x8x8xf32>
    %96 = arith.truncf %95 : vector<1x8x8xf32> to vector<1x8x8xbf16>
    "tpu.trace_start"() <{level = 10 : i32, message = "bqk,bkd->bqd"}> : () -> ()
    %cst_27 = arith.constant dense<0.000000e+00> : vector<1x8x8xf32>
    %97 = tpu.matmul %96, %84, %cst_27 {dimension_numbers = #tpu.dot_dimension_numbers<[2], [1], [1], [2], [0, 0, 0, 1, 1, 2], [0], [0]>} : vector<1x8x8xbf16>, vector<1x8x8xbf16>, vector<1x8x8xf32> -> vector<1x8x8xf32>
    "tpu.trace_stop"() : () -> ()
    %98 = tpu.concatenate %49, %65, %81, %97 in 2 : vector<1x8x8xf32>, vector<1x8x8xf32>, vector<1x8x8xf32>, vector<1x8x8xf32> -> vector<1x8x32xf32>
    %99 = vector.shape_cast %98 : vector<1x8x32xf32> to vector<8x32xf32>
    %100 = arith.truncf %99 : vector<8x32xf32> to vector<8x32xbf16>
    %c0_28 = arith.constant 0 : index
    %c0_29 = arith.constant 0 : index
    %101 = vector.load %arg5[%c0_28, %c0_29] : memref<32x32xbf16, #tpu.memory_space<vmem>>, vector<32x32xbf16>
    %cst_30 = arith.constant dense<0.000000e+00> : vector<8x32xf32>
    %102 = tpu.matmul %100, %101, %cst_30 {dimension_numbers = #tpu.dot_dimension_numbers<[1], [0], [0], [1], [0, 0, 1, 1], [], []>} : vector<8x32xbf16>, vector<32x32xbf16>, vector<8x32xf32> -> vector<8x32xf32>
    %c0_31 = arith.constant 0 : index
    %c0_32 = arith.constant 0 : index
    %103 = vector.load %arg6[%c0_31, %c0_32] : memref<1x32xf32, #tpu.memory_space<vmem>>, vector<1x32xf32>
    %104 = vector.shape_cast %103 : vector<1x32xf32> to vector<32xf32>
    %105 = vector.shape_cast %104 : vector<32xf32> to vector<1x32xf32>
    %106 = vector.broadcast %105 : vector<1x32xf32> to vector<8x32xf32>
    %107 = arith.addf %102, %106 : vector<8x32xf32>
    %108 = arith.addf %107, %0 : vector<8x32xf32>
    %c0_33 = arith.constant 0 : index
    %c0_34 = arith.constant 0 : index
    %109 = vector.load %arg7[%c0_33, %c0_34] : memref<1x32xf32, #tpu.memory_space<vmem>>, vector<1x32xf32>
    %110 = vector.shape_cast %109 : vector<1x32xf32> to vector<32xf32>
    %c0_35 = arith.constant 0 : index
    %c0_36 = arith.constant 0 : index
    %111 = vector.load %arg8[%c0_35, %c0_36] : memref<1x32xf32, #tpu.memory_space<vmem>>, vector<1x32xf32>
    %112 = vector.shape_cast %111 : vector<1x32xf32> to vector<32xf32>
    %cst_37 = arith.constant dense<0.000000e+00> : vector<8xf32>
    %113 = vector.multi_reduction <add>, %108, %cst_37 [1] : vector<8x32xf32> to vector<8xf32>
    %114 = vector.shape_cast %113 : vector<8xf32> to vector<8x1xf32>
    %cst_38 = arith.constant 3.200000e+01 : f32
    %115 = vector.broadcast %cst_38 : f32 to vector<8x1xf32>
    %116 = arith.divf %114, %115 : vector<8x1xf32>
    %117 = vector.broadcast %116 : vector<8x1xf32> to vector<8x32xf32>
    %118 = arith.subf %108, %117 : vector<8x32xf32>
    %119 = arith.mulf %118, %118 : vector<8x32xf32>
    %cst_39 = arith.constant dense<0.000000e+00> : vector<8xf32>
    %120 = vector.multi_reduction <add>, %119, %cst_39 [1] : vector<8x32xf32> to vector<8xf32>
    %121 = vector.shape_cast %120 : vector<8xf32> to vector<8x1xf32>
    %cst_40 = arith.constant 3.200000e+01 : f32
    %122 = vector.broadcast %cst_40 : f32 to vector<8x1xf32>
    %123 = arith.divf %121, %122 : vector<8x1xf32>
    %124 = vector.broadcast %116 : vector<8x1xf32> to vector<8x32xf32>
    %125 = arith.subf %108, %124 : vector<8x32xf32>
    %cst_41 = arith.constant 9.99999974E-6 : f32
    %126 = vector.broadcast %cst_41 : f32 to vector<8x1xf32>
    %127 = arith.addf %123, %126 : vector<8x1xf32>
    %128 = math.rsqrt %127 : vector<8x1xf32>
    %129 = vector.broadcast %128 : vector<8x1xf32> to vector<8x32xf32>
    %130 = arith.mulf %125, %129 : vector<8x32xf32>
    %131 = vector.shape_cast %110 : vector<32xf32> to vector<1x32xf32>
    %132 = vector.broadcast %131 : vector<1x32xf32> to vector<8x32xf32>
    %133 = arith.mulf %130, %132 : vector<8x32xf32>
    %134 = vector.shape_cast %112 : vector<32xf32> to vector<1x32xf32>
    %135 = vector.broadcast %134 : vector<1x32xf32> to vector<8x32xf32>
    %136 = arith.addf %133, %135 : vector<8x32xf32>
    %137 = arith.truncf %136 : vector<8x32xf32> to vector<8x32xbf16>
    %c0_42 = arith.constant 0 : index
    %c0_43 = arith.constant 0 : index
    %138 = vector.load %arg9[%c0_42, %c0_43] : memref<32x64xbf16, #tpu.memory_space<vmem>>, vector<32x64xbf16>
    %cst_44 = arith.constant dense<0.000000e+00> : vector<8x64xf32>
    %139 = tpu.matmul %137, %138, %cst_44 {dimension_numbers = #tpu.dot_dimension_numbers<[1], [0], [0], [1], [0, 0, 1, 1], [], []>} : vector<8x32xbf16>, vector<32x64xbf16>, vector<8x64xf32> -> vector<8x64xf32>
    %c0_45 = arith.constant 0 : index
    %c0_46 = arith.constant 0 : index
    %140 = vector.load %arg10[%c0_45, %c0_46] : memref<1x64xf32, #tpu.memory_space<vmem>>, vector<1x64xf32>
    %141 = vector.shape_cast %140 : vector<1x64xf32> to vector<64xf32>
    %142 = vector.shape_cast %141 : vector<64xf32> to vector<1x64xf32>
    %143 = vector.broadcast %142 : vector<1x64xf32> to vector<8x64xf32>
    %144 = arith.addf %139, %143 : vector<8x64xf32>
    %145 = arith.mulf %144, %144 : vector<8x64xf32>
    %146 = arith.mulf %144, %145 : vector<8x64xf32>
    %cst_47 = arith.constant 4.471500e-02 : f32
    %147 = vector.broadcast %cst_47 : f32 to vector<8x64xf32>
    %148 = arith.mulf %147, %146 : vector<8x64xf32>
    %149 = arith.addf %144, %148 : vector<8x64xf32>
    %cst_48 = arith.constant 0.797884583 : f32
    %150 = vector.broadcast %cst_48 : f32 to vector<8x64xf32>
    %151 = arith.mulf %150, %149 : vector<8x64xf32>
    %152 = math.tanh %151 : vector<8x64xf32>
    %cst_49 = arith.constant 1.000000e+00 : f32
    %153 = vector.broadcast %cst_49 : f32 to vector<8x64xf32>
    %154 = arith.addf %153, %152 : vector<8x64xf32>
    %cst_50 = arith.constant 5.000000e-01 : f32
    %155 = vector.broadcast %cst_50 : f32 to vector<8x64xf32>
    %156 = arith.mulf %155, %154 : vector<8x64xf32>
    %157 = arith.mulf %144, %156 : vector<8x64xf32>
    %158 = arith.truncf %157 : vector<8x64xf32> to vector<8x64xbf16>
    %c0_51 = arith.constant 0 : index
    %c0_52 = arith.constant 0 : index
    %159 = vector.load %arg11[%c0_51, %c0_52] : memref<64x32xbf16, #tpu.memory_space<vmem>>, vector<64x32xbf16>
    %cst_53 = arith.constant dense<0.000000e+00> : vector<8x32xf32>
    %160 = tpu.matmul %158, %159, %cst_53 {dimension_numbers = #tpu.dot_dimension_numbers<[1], [0], [0], [1], [0, 0, 1, 1], [], []>} : vector<8x64xbf16>, vector<64x32xbf16>, vector<8x32xf32> -> vector<8x32xf32>
    %c0_54 = arith.constant 0 : index
    %c0_55 = arith.constant 0 : index
    %161 = vector.load %arg12[%c0_54, %c0_55] : memref<1x32xf32, #tpu.memory_space<vmem>>, vector<1x32xf32>
    %162 = vector.shape_cast %161 : vector<1x32xf32> to vector<32xf32>
    %163 = vector.shape_cast %162 : vector<32xf32> to vector<1x32xf32>
    %164 = vector.broadcast %163 : vector<1x32xf32> to vector<8x32xf32>
    %165 = arith.addf %160, %164 : vector<8x32xf32>
    %166 = arith.addf %165, %108 : vector<8x32xf32>
    %c0_56 = arith.constant 0 : index
    %c0_57 = arith.constant 0 : index
    %167 = vector.load %arg13[%c0_56, %c0_57] : memref<8x32xf32, #tpu.memory_space<vmem>>, vector<8x32xf32>
    tpu.vector_store %arg13[%c0_56, %c0_57], %166 {strides = array<i32>} : memref<8x32xf32, #tpu.memory_space<vmem>>, vector<8x32xf32>,
    return
  }
  func.func @transform_0(%arg0: i32) -> (i32, i32) {
    %c0_i32 = arith.constant 0 : i32
    %c0_i32_0 = arith.constant 0 : i32
    return %arg0, %c0_i32 : i32, i32
  }
  func.func @transform_1(%arg0: i32) -> (i32, i32) {
    %c0_i32 = arith.constant 0 : i32
    %c0_i32_0 = arith.constant 0 : i32
    %c0_i32_1 = arith.constant 0 : i32
    return %c0_i32, %c0_i32_0 : i32, i32
  }
  func.func @transform_2(%arg0: i32) -> (i32, i32) {
    %c0_i32 = arith.constant 0 : i32
    %c0_i32_0 = arith.constant 0 : i32
    %c0_i32_1 = arith.constant 0 : i32
    return %c0_i32, %c0_i32_0 : i32, i32
  }
  func.func @transform_3(%arg0: i32) -> (i32, i32) {
    %c0_i32 = arith.constant 0 : i32
    %c0_i32_0 = arith.constant 0 : i32
    %c0_i32_1 = arith.constant 0 : i32
    return %c0_i32, %c0_i32_0 : i32, i32
  }
  func.func @transform_4(%arg0: i32) -> (i32, i32) {
    %c0_i32 = arith.constant 0 : i32
    %c0_i32_0 = arith.constant 0 : i32
    %c0_i32_1 = arith.constant 0 : i32
    return %c0_i32, %c0_i32_0 : i32, i32
  }
  func.func @transform_5(%arg0: i32) -> (i32, i32) {
    %c0_i32 = arith.constant 0 : i32
    %c0_i32_0 = arith.constant 0 : i32
    %c0_i32_1 = arith.constant 0 : i32
    return %c0_i32, %c0_i32_0 : i32, i32
  }
  func.func @transform_6(%arg0: i32) -> (i32, i32) {
    %c0_i32 = arith.constant 0 : i32
    %c0_i32_0 = arith.constant 0 : i32
    %c0_i32_1 = arith.constant 0 : i32
    return %c0_i32, %c0_i32_0 : i32, i32
  }
  func.func @transform_7(%arg0: i32) -> (i32, i32) {
    %c0_i32 = arith.constant 0 : i32
    %c0_i32_0 = arith.constant 0 : i32
    %c0_i32_1 = arith.constant 0 : i32
    return %c0_i32, %c0_i32_0 : i32, i32
  }
  func.func @transform_8(%arg0: i32) -> (i32, i32) {
    %c0_i32 = arith.constant 0 : i32
    %c0_i32_0 = arith.constant 0 : i32
    %c0_i32_1 = arith.constant 0 : i32
    return %c0_i32, %c0_i32_0 : i32, i32
  }
  func.func @transform_9(%arg0: i32) -> (i32, i32) {
    %c0_i32 = arith.constant 0 : i32
    %c0_i32_0 = arith.constant 0 : i32
    %c0_i32_1 = arith.constant 0 : i32
    return %c0_i32, %c0_i32_0 : i32, i32
  }
  func.func @transform_10(%arg0: i32) -> (i32, i32) {
    %c0_i32 = arith.constant 0 : i32
    %c0_i32_0 = arith.constant 0 : i32
    %c0_i32_1 = arith.constant 0 : i32
    return %c0_i32, %c0_i32_0 : i32, i32
  }
  func.func @transform_11(%arg0: i32) -> (i32, i32) {
    %c0_i32 = arith.constant 0 : i32
    %c0_i32_0 = arith.constant 0 : i32
    %c0_i32_1 = arith.constant 0 : i32
    return %c0_i32, %c0_i32_0 : i32, i32
  }
  func.func @transform_12(%arg0: i32) -> (i32, i32) {
    %c0_i32 = arith.constant 0 : i32
    %c0_i32_0 = arith.constant 0 : i32
    return %arg0, %c0_i32 : i32, i32
  }
}

</mosaic_0001>

<bundles_post_ra>
// kernel: transformer_forward.2
= control target key start
LH: loop header
LB: loop body
LE: loop exit
PB: predicated region body
PF: predicated region fallthrough
CT: control target
= control target key end

     0   :  { %s1570_s21 = smov 0   ;;  %s1744_s0 = inlined_call_operand.vmem [shape: f32[16,32], index: 0, kind: input, shape index: {}, may-alias: {0,12}]   ;;  %s1745_s1 = inlined_call_operand.vmem [shape: f32[1,32], index: 1, kind: input, shape index: {}]   ;;  %s1746_s2 = inlined_call_operand.vmem [shape: f32[1,32], index: 2, kind: input, shape index: {}]   ;;  %s1747_s3 = inlined_call_operand.vmem [shape: bf16[32,96], index: 3, kind: input, shape index: {}]   ;;  %s1748_s4 = inlined_call_operand.vmem [shape: bf16[32,32], index: 4, kind: input, shape index: {}]   ;;  %s1749_s5 = inlined_call_operand.vmem [shape: f32[1,32], index: 5, kind: input, shape index: {}]   ;;  %s1750_s6 = inlined_call_operand.vmem [shape: f32[1,32], index: 6, kind: input, shape index: {}]   ;;  %s1751_s7 = inlined_call_operand.vmem [shape: f32[1,32], index: 7, kind: input, shape index: {}]   ;;  %s1752_s8 = inlined_call_operand.vmem [shape: bf16[32,64], index: 8, kind: input, shape index: {}]   ;;  %s1753_s9 = inlined_call_operand.vmem [shape: f32[1,64], index: 9, kind: input, shape index: {}]   ;;  %s1754_s10 = inlined_call_operand.vmem [shape: bf16[64,32], index: 10, kind: input, shape index: {}]   ;;  %s1755_s11 = inlined_call_operand.vmem [shape: f32[1,32], index: 11, kind: input, shape index: {}]   ;;  %s1756_s12 = inlined_call_operand.vmem [shape: f32[16,32], index: 12, kind: output, shape index: {}, may-alias: {0,12}]  }
   0x1 LB: > { %s1273_s22 = sadd.s32 4294967295, %s1487_s21   ;;  %p1277_p0 = scmp.ge.s32.totalorder %s1487_s21, 1  ;;  %s1487_s21 = sphi %s1570_s21, %s22_s21  }
   0x2   : > { %p361_p1 = scmp.lt.s32.totalorder %s1487_s21, 3 }
   0x4   : > { %p362_p2 = pnand %p1277_p0, %p361_p1 }
   0x5   : > { %p401_p3 = scmp.lt.s32.totalorder (!%p362_p2), %s1273_s22, 1  ;;  %vm413_vm0 = vcmask (!%p362_p2), 261120   ;;  %v1449_v7 = vld [vmem:[%s1747_s3] sm:$0xff] (!%p362_p2)   ;;  %v1489_v8 = vmov (!%p362_p2), 0.0   ;;  %vm1490_vm1 = vmmov (!%p362_p2), 0   ;;  %v1450_v9 = vld [vmem:[%s1747_s3 + $0x8] sm:$0xff] (!%p362_p2)  }
   0x6   : > { %365 = sbr.rel (%p362_p2) target bundleno = 2579 (0xa13), region = 68  ;;  %1341 = vmatprep.subr.bf16.mxu0 (!%p362_p2), %v1489_v8  ;;  %1345 = vmatprep.mubr.msk.bf16.mxu0 (!%p362_p2), %vm1490_vm1, %v1489_v8  ;;  %v1280_v14 = vld [vmem:[%s1745_s1] ss:$0 sm:$0xff] (!%p362_p2)  ;;  %s1491_s17 = smov (!%p362_p2), 120   ;;  %vm506_vm2 = vcmask (!%p362_p2), 64512   ;;  %vm570_vm3 = vcmask (!%p362_p2), 1043456  }
   0x7   : > { %1342 = vmatpush3.bf16.msra.mxu0 (!%p362_p2), %v1449_v7  ;;  %1349 = vmatprep.subr.bf16.mxu1 (!%p362_p2), %v1489_v8  ;;  %v1281_v16 = vld [vmem:[%s1746_s2] ss:$0 sm:$0xff] (!%p362_p2)  ;;  %s1492_s18 = smov (!%p362_p2), 96   ;;  %s1493_s19 = smov (!%p362_p2), 88   ;;  %vm957_vm4 = vcmask (!%p362_p2), 130048   ;;  %vm959_vm5 = vcmask (!%p362_p2), 195584  }
   0x8   : > { %1343 = vmatprep.subr.bf16.mxu0 (!%p362_p2), %v1489_v8  ;;  %1351 = vmatprep.mubr.msk.bf16.mxu1 (!%p362_p2), %vm1490_vm1, %v1489_v8  ;;  %s1494_s20 = smov (!%p362_p2), 80   ;;  %s1495_s24 = smov (!%p362_p2), 112   ;;  %vm1174_vm6 = vcmask (!%p362_p2), 523264  }
   0x9   : > { %s1496_s25 = smov (!%p362_p2), 72   ;;  %s1498_s27 = smov (!%p362_p2), 64  }
   0xa   : > { %s1499_s28 = smov (!%p362_p2), 56   ;;  %s1500_s29 = smov (!%p362_p2), 48  }
   0xb   : > { %1344 = vmatpush3.bf16.msra.mxu0 (!%p362_p2), %v1450_v9  ;;  %s1501_s30 = smov (!%p362_p2), 40   ;;  %s1502_s13 = smov (!%p362_p2), 8  }
   0xc   : > { %1355 = vmatprep.subr.bf16.mxu0 (!%p362_p2), %v1489_v8 }
   0xd   : > { %s1758_s22 = smov (!%p401_p3, %s1273_s22), 1 }
   0xe   : > { %s1278_s23 = sshll.u32 %s1758_s22, 3 }
   0xf   : > { %s404_s26 = scalar_lea.vmem %s1744_s0, %s1278_s23  ;;  %s408_s14 = scalar_lea.vmem %s1756_s12, %s1278_s23 }
  0x10   : > { %v1586_v0 = vld [vmem:[%s404_s26] sm:$0xff]  ;;  %s1497_s26 = smov 104  }
  0x11   : > { %v414_v1 = vsel %vm413_vm0, %v1586_v0, 0.0 }
  0x12   : > { %415 = vadd.xlane.f32.xlu0 %v414_v1 }
  0x9f   : > { %v416_v2 = vpop.xlane.xlu0 %415 }
  0xa0   : > { %v418_v3 = vmul.f32 0.03125, %v416_v2 }
  0xa2   : > { %v419_v4 = vsub.f32 %v1586_v0, %v418_v3 }
  0xa4   : > { %v420_v5 = vmul.f32 %v419_v4, %v419_v4 }
  0xa6   : > { %v421_v6 = vsel %vm413_vm0, %v420_v5, 0.0 }
  0xa7   : > { %422 = vadd.xlane.f32.xlu0 %v421_v6 }
 0x134   : > { %v423_v10 = vpop.xlane.xlu0 %422 }
 0x135   : > { %v424_v11 = vmul.f32 0.03125, %v423_v10 }
 0x137   : > { %v425_v12 = vadd.f32 1e-05, %v424_v11 }
 0x139   : > { %1459 = vrsqrt.f32 %v425_v12 }
 0x143   : > { %v1460_v13 = vpop.eup %1459 }
 0x144   : > { %v427_v15 = vmul.f32 %v1460_v13, %v419_v4 }
 0x146   : > { %v434_v17 = vmul.f32 %v1280_v14, %v427_v15 }
 0x148   : > { %v441_v18 = vadd.f32 %v1281_v16, %v434_v17 }
 0x14a   : > { %v442_v19 = vpack.c.bf16 %v441_v18, %v441_v18 }
 0x14c   : > { %1346 = vmatmul.mubr.msk.bf16.vlgmr.msra.gmra.mrb[0].mxu0 %vm413_vm0, %v442_v19 }
 0x14d   : > { %1357 = vmatprep.mubr.msk.bf16.mxu0 %vm1490_vm1, %v1489_v8 }
 0x21f   : > { %v496_v20 = vpop.f32.mrb[0].mxu0 }
 0x220   : > { %v1615_v21 = vpack.c.bf16 %v496_v20, %v496_v20  ;;  %v1347_v22 = vpop.f32.mrb[1].mxu0 }
 0x221   : > { %v499_v23 = vpop.f32.mrb[2].mxu0 }
 0x222   : > { %614 = vrot.lane.b32.xlu0 %v1615_v21, %s1491_s17  ;;  %504 = vrot.lane.b32.xlu1 %v1615_v21, %s1492_s18  ;;  %v1348_v24 = vpop.f32.mrb[3].mxu0  ;;  %s1503_s18 = smov 16  }
 0x226   : > { %616 = vrot.lane.b32.xlu1 %v1615_v21, %s1493_s19  ;;  %s1504_s19 = smov 24  }
 0x22a   : > { %726 = vrot.lane.b32.xlu1 %v1615_v21, %s1494_s20 }
 0x22e   : > { %724 = vrot.lane.b32.xlu1 %v1615_v21, %s1495_s24 }
 0x232   : > { %836 = vrot.lane.b32.xlu1 %v1615_v21, %s1496_s25 }
 0x236   : > { %834 = vrot.lane.b32.xlu1 %v1615_v21, %s1497_s26 }
 0x294   : > { %v505_v25 = vpop.permute.xlu1 %504  ;;  %v615_v30 = vpop.permute.xlu0 %614 }
 0x295   : > { %v511_v26 = vsel %vm506_vm2, %v505_v25, 0 }
 0x296   : > { %1350 = vmatpush3.bf16.xpose.msra.mxu1 %v511_v26 }
 0x297   : > { %1361 = vmatprep.subr.bf16.mxu1 %v1489_v8 }
 0x298   : > { %v617_v27 = vpop.permute.xlu1 %616 }
 0x299   : > { %v622_v28 = vsel %vm506_vm2, %v617_v27, 0 }
 0x29c   : > { %v727_v29 = vpop.permute.xlu1 %726 }
 0x29d   : > { %1352 = vmatmul.mubr.msk.bf16.vlgmr.msra.gmra.mrb[0].mxu1 %vm506_vm2, %v1615_v21  ;;  %v732_v32 = vsel %vm506_vm2, %v727_v29, 0 }
 0x29e   : > { %1362 = vmatpush3.bf16.xpose.msra.mxu1 %v622_v28  ;;  %1363 = vmatprep.mubr.msk.bf16.mxu1 %vm1490_vm1, %v1489_v8 }
 0x29f   : > { %1373 = vmatprep.subr.bf16.mxu1 %v1489_v8 }
 0x2a0   : > { %v725_v31 = vpop.permute.xlu1 %724 }
 0x2a4   : > { %v837_v33 = vpop.permute.xlu1 %836 }
 0x2a5   : > { %1364 = vmatmul.mubr.msk.bf16.vlgmr.msra.gmra.mrb[4].mxu1 %vm506_vm2, %v615_v30  ;;  %v842_v34 = vsel %vm506_vm2, %v837_v33, 0 }
 0x2a6   : > { %1374 = vmatpush3.bf16.xpose.msra.mxu1 %v732_v32  ;;  %1375 = vmatprep.mubr.msk.bf16.mxu1 %vm1490_vm1, %v1489_v8 }
 0x2a7   : > { %1385 = vmatprep.subr.bf16.mxu1 %v1489_v8 }
 0x2a8   : > { %v835_v35 = vpop.permute.xlu1 %834 }
 0x2ad   : > { %1376 = vmatmul.mubr.msk.bf16.vlgmr.msra.gmra.mrb[8].mxu1 %vm506_vm2, %v725_v31 }
 0x2ae   : > { %1386 = vmatpush3.bf16.xpose.msra.mxu1 %v842_v34  ;;  %1387 = vmatprep.mubr.msk.bf16.mxu1 %vm1490_vm1, %v1489_v8 }
 0x2af   : > { %1397 = vmatprep.subr.bf16.mxu1 %v1489_v8 }
 0x2b5   : > { %1388 = vmatmul.mubr.msk.bf16.vlgmr.msra.gmra.mrb[12].mxu1 %vm506_vm2, %v835_v35 }
 0x2b6   : > { %1401 = vmatprep.mubr.msk.bf16.mxu1 %vm1490_vm1, %v1489_v8 }
 0x370   : > { %v547_v36 = vpop.f32.mrb[0].mxu1 }
 0x371   : > { %v1353_v37 = vpop.f32.mrb[1].mxu1  ;;  %v553_v38 = vsel %vm506_vm2, %v547_v36, -inf }
 0x372   : > { %554 = vmax.xlane.f32.xlu1 %v553_v38  ;;  %v550_v39 = vpop.f32.mrb[2].mxu1 }
 0x373   : > { %v1354_v40 = vpop.f32.mrb[3].mxu1 }
 0x378   : > { %v658_v41 = vpop.f32.mrb[4].mxu1 }
 0x379   : > { %v1365_v42 = vpop.f32.mrb[5].mxu1  ;;  %v664_v43 = vsel %vm506_vm2, %v658_v41, -inf }
 0x37a   : > { %665 = vmax.xlane.f32.xlu0 %v664_v43  ;;  %v661_v44 = vpop.f32.mrb[6].mxu1 }
 0x37b   : > { %v1366_v45 = vpop.f32.mrb[7].mxu1 }
 0x380   : > { %v768_v46 = vpop.f32.mrb[8].mxu1 }
 0x381   : > { %v1377_v47 = vpop.f32.mrb[9].mxu1  ;;  %v774_v48 = vsel %vm506_vm2, %v768_v46, -inf }
 0x382   : > { %775 = vmax.xlane.f32.xlu1 %v774_v48  ;;  %v771_v49 = vpop.f32.mrb[10].mxu1  ;;  %v1452_v47 = vld [vmem:[%s1748_s4 + $0x8] sm:$0xff]  }
 0x383   : > { %v1378_v50 = vpop.f32.mrb[11].mxu1 }
 0x388   : > { %v878_v51 = vpop.f32.mrb[12].mxu1 }
 0x389   : > { %v1389_v52 = vpop.f32.mrb[13].mxu1  ;;  %v884_v53 = vsel %vm506_vm2, %v878_v51, -inf }
 0x38a   : > { %885 = vmax.xlane.f32.xlu0 %v884_v53  ;;  %v881_v54 = vpop.f32.mrb[14].mxu1 }
 0x38b   : > { %v1390_v55 = vpop.f32.mrb[15].mxu1 }
 0x3ff   : > { %v555_v56 = vpop.xlane.xlu1 %554 }
 0x400   : > { %v556_v57 = vsub.f32 %v547_v36, %v555_v56 }
 0x402   : > { %v557_v58 = vmul.f32 1.442695, %v556_v57 }
 0x404   : > { %1461 = vpow2.f32 %v557_v58 }
 0x407   : > { %v666_v59 = vpop.xlane.xlu0 %665 }
 0x408   : > { %v667_v60 = vsub.f32 %v658_v41, %v666_v59 }
 0x40a   : > { %v668_v61 = vmul.f32 1.442695, %v667_v60 }
 0x40c   : > { %1463 = vpow2.f32 %v668_v61 }
 0x40e   : > { %v1462_v62 = vpop.eup %1461 }
 0x40f   : > { %v559_v63 = vsel %vm506_vm2, %v1462_v62, 0.0  ;;  %v776_v9 = vpop.xlane.xlu1 %775 }
 0x410   : > { %560 = vadd.xlane.f32.xlu1 %v559_v63  ;;  %v777_v10 = vsub.f32 %v768_v46, %v776_v9  ;;  %v1451_v46 = vld [vmem:[%s1748_s4] sm:$0xff]  }
 0x411   : > { %1398 = vmatpush3.bf16.msra.mxu1 %v1451_v46  ;;  %v1293_v63 = vld [vmem:[%s1749_s5] ss:$0 sm:$0xff] }
 0x412   : > { %v778_v11 = vmul.f32 1.442695, %v777_v10  ;;  %1399 = vmatprep.subr.bf16.mxu1 %v1489_v8 }
 0x415   : > { %1400 = vmatpush3.bf16.msra.mxu1 %v1452_v47 }
 0x416   : > { %v1464_v1 = vpop.eup %1463  ;;  %1413 = vmatprep.subr.bf16.mxu1 %v1489_v8 }
 0x417   : > { %v886_v2 = vpop.xlane.xlu0 %885  ;;  %v670_v3 = vsel %vm506_vm2, %v1464_v1, 0.0 }
 0x418   : > { %v887_v4 = vsub.f32 %v878_v51, %v886_v2  ;;  %671 = vadd.xlane.f32.xlu0 %v670_v3 }
 0x41a   : > { %v888_v5 = vmul.f32 1.442695, %v887_v4 }
 0x41c   : > { %1465 = vpow2.f32 %v888_v5 }
 0x41d   : > { %1467 = vpow2.f32 %v778_v11 }
 0x421   : > { %565 = vrot.lane.b32.xlu1 %v1615_v21, %s1498_s27 }
 0x426   : > { %v1466_v6 = vpop.eup %1465 }
 0x427   : > { %v890_v7 = vsel %vm506_vm2, %v1466_v6, 0.0  ;;  %v1468_v12 = vpop.eup %1467 }
 0x428   : > { %891 = vadd.xlane.f32.xlu0 %v890_v7  ;;  %v780_v13 = vsel %vm506_vm2, %v1468_v12, 0.0 }
 0x43e   : > { %676 = vrot.lane.b32.xlu0 %v1615_v21, %s1499_s28 }
 0x445   : > { %781 = vadd.xlane.f32.xlu1 %v780_v13 }
 0x456   : > { %786 = vrot.lane.b32.xlu1 %v1615_v21, %s1500_s29 }
 0x45a   : > { %896 = vrot.lane.b32.xlu1 %v1615_v21, %s1501_s30 }
 0x49d   : > { %v561_v14 = vpop.xlane.xlu1 %560 }
 0x49e   : > { %1469 = vrcp.f32 %v561_v14  ;;  %v1453_v14 = vld [vmem:[%s1752_s8] sm:$0xff]  }
 0x4a1   : > { %v566_v15 = vpop.permute.xlu1 %565 }
 0x4a2   : > { %v572_v16 = vsel %vm570_vm3, %v566_v15, 0 }
 0x4a3   : > { %1356 = vmatpush3.bf16.msra.mxu0 %v572_v16 }
 0x4a4   : > { %1367 = vmatprep.subr.bf16.mxu0 %v1489_v8 }
 0x4a5   : > { %v672_v18 = vpop.xlane.xlu0 %671 }
 0x4a6   : > { %1471 = vrcp.f32 %v672_v18 }
 0x4a8   : > { %v1470_v17 = vpop.eup %1469 }
 0x4a9   : > { %v563_v19 = vmul.f32 %v1470_v17, %v1462_v62 }
 0x4ab   : > { %v564_v20 = vpack.c.bf16 %v563_v19, %v563_v19  ;;  %v1297_v19 = vld [vmem:[%s1750_s6] ss:$0 sm:$0xff] }
 0x4ad   : > { %1358 = vmatmul.mubr.msk.bf16.vlgmr.msra.gmra.mrb[4].mxu0 %vm506_vm2, %v564_v20 }
 0x4ae   : > { %1369 = vmatprep.mubr.msk.bf16.mxu0 %vm1490_vm1, %v1489_v8 }
 0x4b0   : > { %v1472_v21 = vpop.eup %1471 }
 0x4b1   : > { %v674_v23 = vmul.f32 %v1472_v21, %v1464_v1  ;;  %v1298_v21 = vld [vmem:[%s1751_s7] ss:$0 sm:$0xff] }
 0x4b3   : > { %v675_v26 = vpack.c.bf16 %v674_v23, %v674_v23 }
 0x4b5   : > { %v892_v22 = vpop.xlane.xlu0 %891 }
 0x4b9   : > { %v677_v24 = vpop.permute.xlu0 %676 }
 0x4ba   : > { %v682_v25 = vsel %vm570_vm3, %v677_v24, 0 }
 0x4bb   : > { %1368 = vmatpush3.bf16.msra.mxu0 %v682_v25  ;;  %v1455_v25 = vld [vmem:[%s1754_s10] sm:$0xff]  }
 0x4bc   : > { %1379 = vmatprep.subr.bf16.mxu0 %v1489_v8 }
 0x4be   : > { %1370 = vmatmul.mubr.msk.bf16.vlgmr.msra.gmra.mrb[8].mxu0 %vm506_vm2, %v675_v26  ;;  %v1456_v26 = vld [vmem:[%s1754_s10 + $0x8] sm:$0xff]  }
 0x4bf   : > { %1381 = vmatprep.mubr.msk.bf16.mxu0 %vm1490_vm1, %v1489_v8 }
 0x4d2   : > { %v782_v27 = vpop.xlane.xlu1 %781 }
 0x4d3   : > { %1473 = vrcp.f32 %v782_v27  ;;  %v1457_v27 = vld [vmem:[%s1754_s10 + $0x10] sm:$0xff]  }
 0x4d4   : > { %1475 = vrcp.f32 %v892_v22 }
 0x4d6   : > { %v787_v28 = vpop.permute.xlu1 %786 }
 0x4d7   : > { %v792_v29 = vsel %vm570_vm3, %v787_v28, 0  ;;  %v1458_v28 = vld [vmem:[%s1754_s10 + $0x18] sm:$0xff]  }
 0x4d8   : > { %1380 = vmatpush3.bf16.msra.mxu0 %v792_v29  ;;  %v1299_v29 = vld [vmem:[%s1753_s9] ss:$0 sm:$0xff] }
 0x4d9   : > { %1391 = vmatprep.subr.bf16.mxu0 %v1489_v8 }
 0x4da   : > { %v897_v32 = vpop.permute.xlu1 %896 }
 0x4db   : > { %v902_v35 = vsel %vm570_vm3, %v897_v32, 0 }
 0x4dd   : > { %v1474_v30 = vpop.eup %1473 }
 0x4de   : > { %v784_v31 = vmul.f32 %v1474_v30, %v1468_v12  ;;  %v1476_v34 = vpop.eup %1475 }
 0x4df   : > { %v894_v36 = vmul.f32 %v1476_v34, %v1466_v6 }
 0x4e0   : > { %v785_v33 = vpack.c.bf16 %v784_v31, %v784_v31 }
 0x4e1   : > { %v895_v37 = vpack.c.bf16 %v894_v36, %v894_v36 }
 0x4e2   : > { %1382 = vmatmul.mubr.msk.bf16.vlgmr.msra.gmra.mrb[12].mxu0 %vm506_vm2, %v785_v33 }
 0x4e3   : > { %1392 = vmatpush3.bf16.msra.mxu0 %v902_v35  ;;  %1393 = vmatprep.mubr.msk.bf16.mxu0 %vm1490_vm1, %v1489_v8 }
 0x4e4   : > { %1405 = vmatprep.subr.bf16.mxu0 %v1489_v8 }
 0x4ea   : > { %1394 = vmatmul.mubr.msk.bf16.vlgmr.msra.gmra.mrb[16].mxu0 %vm506_vm2, %v895_v37 }
 0x4eb   : > { %1409 = vmatprep.mubr.msk.bf16.mxu0 %vm1490_vm1, %v1489_v8  ;;  %1406 = vmatpush3.bf16.msra.mxu0 %v1453_v14 }
 0x4ec   : > { %1407 = vmatprep.subr.bf16.mxu0 %v1489_v8 }
 0x580   : > { %v608_v38 = vpop.f32.mrb[4].mxu0 }
 0x581   : > { %v1359_v39 = vpop.f32.mrb[5].mxu0 }
 0x582   : > { %v611_v40 = vpop.f32.mrb[6].mxu0 }
 0x583   : > { %v1360_v41 = vpop.f32.mrb[7].mxu0 }
 0x591   : > { %v718_v42 = vpop.f32.mrb[8].mxu0 }
 0x592   : > { %945 = vrot.lane.b32.xlu0 %v718_v42, %s1502_s13  ;;  %v1371_v43 = vpop.f32.mrb[9].mxu0 }
 0x593   : > { %v721_v44 = vpop.f32.mrb[10].mxu0 }
 0x594   : > { %v1372_v45 = vpop.f32.mrb[11].mxu0  ;;  %v1303_v44 = vld [vmem:[%s1755_s11] ss:$0 sm:$0xff] }
 0x5b5   : > { %v828_v48 = vpop.f32.mrb[12].mxu0 }
 0x5b6   : > { %949 = vrot.lane.b32.xlu1 %v828_v48, %s1503_s18  ;;  %v1383_v49 = vpop.f32.mrb[13].mxu0 }
 0x5b7   : > { %v831_v50 = vpop.f32.mrb[14].mxu0 }
 0x5b8   : > { %v1384_v51 = vpop.f32.mrb[15].mxu0 }
 0x5bd   : > { %v938_v52 = vpop.f32.mrb[16].mxu0 }
 0x5be   : > { %953 = vrot.lane.b32.xlu0 %v938_v52, %s1504_s19  ;;  %v1395_v53 = vpop.f32.mrb[17].mxu0 }
 0x5bf   : > { %v941_v54 = vpop.f32.mrb[18].mxu0 }
 0x5c0   : > { %v1396_v55 = vpop.f32.mrb[19].mxu0 }
 0x604   : > { %v946_v56 = vpop.permute.xlu0 %945 }
 0x605   : > { %v956_v58 = vsel %vm506_vm2, %v608_v38, %v946_v56 }
 0x628   : > { %v950_v57 = vpop.permute.xlu1 %949 }
 0x629   : > { %v958_v59 = vsel %vm957_vm4, %v956_v58, %v950_v57 }
 0x630   : > { %v954_v60 = vpop.permute.xlu0 %953 }
 0x631   : > { %v960_v61 = vsel %vm959_vm5, %v958_v59, %v954_v60 }
 0x632   : > { %v961_v62 = vpack.c.bf16 %v960_v61, %v960_v61 }
 0x634   : > { %1402 = vmatmul.mubr.msk.bf16.vlgmr.msra.gmra.mrb[16].mxu1 %vm413_vm0, %v961_v62 }
 0x635   : > { %1421 = vmatprep.mubr.msk.bf16.mxu1 %vm1490_vm1, %v1489_v8  ;;  %1414 = vmatpush3.bf16.msra.mxu1 %v1455_v25 }
 0x636   : > { %1415 = vmatprep.subr.bf16.mxu1 %v1489_v8 }
 0x639   : > { %1416 = vmatpush3.bf16.msra.mxu1 %v1456_v26 }
 0x63a   : > { %1417 = vmatprep.subr.bf16.mxu1 %v1489_v8 }
 0x63d   : > { %1418 = vmatpush3.bf16.msra.mxu1 %v1457_v27 }
 0x63e   : > { %1419 = vmatprep.subr.bf16.mxu1 %v1489_v8 }
 0x641   : > { %1420 = vmatpush3.bf16.msra.mxu1 %v1458_v28 }
 0x707   : > { %v1022_v1 = vpop.f32.mrb[16].mxu1 }
 0x708   : > { %v1023_v2 = vadd.f32 %v1293_v63, %v1022_v1  ;;  %v1403_v3 = vpop.f32.mrb[17].mxu1 }
 0x709   : > { %v1025_v4 = vpop.f32.mrb[18].mxu1 }
 0x70a   : > { %v1693_v5 = vadd.f32 %v1023_v2, %v1586_v0  ;;  %v1404_v6 = vpop.f32.mrb[19].mxu1  ;;  %v1454_v0 = vld [vmem:[%s1752_s8 + $0x8] sm:$0xff]  }
 0x70b   : > { %1408 = vmatpush3.bf16.msra.mxu0 %v1454_v0 }
 0x70c   : > { %v1031_v7 = vsel %vm413_vm0, %v1693_v5, 0.0 }
 0x70d   : > { %1032 = vadd.xlane.f32.xlu1 %v1031_v7 }
 0x79a   : > { %v1033_v9 = vpop.xlane.xlu1 %1032 }
 0x79b   : > { %v1034_v10 = vmul.f32 0.03125, %v1033_v9 }
 0x79d   : > { %v1035_v11 = vsub.f32 %v1693_v5, %v1034_v10 }
 0x79f   : > { %v1036_v12 = vmul.f32 %v1035_v11, %v1035_v11 }
 0x7a1   : > { %v1037_v13 = vsel %vm413_vm0, %v1036_v12, 0.0 }
 0x7a2   : > { %1038 = vadd.xlane.f32.xlu0 %v1037_v13 }
 0x82f   : > { %v1039_v15 = vpop.xlane.xlu0 %1038 }
 0x830   : > { %v1040_v16 = vmul.f32 0.03125, %v1039_v15 }
 0x832   : > { %v1041_v17 = vadd.f32 1e-05, %v1040_v16 }
 0x834   : > { %1477 = vrsqrt.f32 %v1041_v17 }
 0x83e   : > { %v1478_v18 = vpop.eup %1477 }
 0x83f   : > { %v1043_v20 = vmul.f32 %v1478_v18, %v1035_v11 }
 0x841   : > { %v1050_v22 = vmul.f32 %v1297_v19, %v1043_v20 }
 0x843   : > { %v1057_v23 = vadd.f32 %v1298_v21, %v1050_v22 }
 0x845   : > { %v1058_v24 = vpack.c.bf16 %v1057_v23, %v1057_v23 }
 0x847   : > { %1410 = vmatmul.mubr.msk.bf16.vlgmr.msra.gmra.mrb[20].mxu0 %vm413_vm0, %v1058_v24 }
 0x91a   : > { %v1119_v30 = vpop.f32.mrb[20].mxu0 }
 0x91b   : > { %v1120_v31 = vadd.f32 %v1299_v29, %v1119_v30  ;;  %v1411_v32 = vpop.f32.mrb[21].mxu0 }
 0x91c   : > { %v1122_v33 = vpop.f32.mrb[22].mxu0 }
 0x91d   : > { %v1125_v34 = vmul.f32 %v1120_v31, %v1120_v31  ;;  %v1412_v35 = vpop.f32.mrb[23].mxu0 }
 0x91f   : > { %v1126_v36 = vmul.f32 %v1125_v34, %v1120_v31 }
 0x921   : > { %v1127_v37 = vmul.f32 0.044715, %v1126_v36 }
 0x923   : > { %v1128_v38 = vadd.f32 %v1127_v37, %v1120_v31 }
 0x925   : > { %v1129_v8 = vmul.f32 0.7978846, %v1128_v38 }
 0x927   : > { %1479 = vtanh.f32 %v1129_v8 }
 0x931   : > { %v1480_v39 = vpop.eup %1479 }
 0x932   : > { %v1131_v40 = vadd.f32 1.0, %v1480_v39 }
 0x934   : > { %v1132_v41 = vmul.f32 0.5, %v1131_v40 }
 0x936   : > { %v1133_v42 = vmul.f32 %v1132_v41, %v1120_v31 }
 0x938   : > { %v1134_v43 = vpack.c.bf16 %v1133_v42, %v1133_v42 }
 0x93a   : > { %1422 = vmatmul.mubr.msk.bf16.vlgmr.msra.gmra.mrb[20].mxu1 %vm1174_vm6, %v1134_v43 }
 0xa0d   : > { %v1212_v45 = vpop.f32.mrb[20].mxu1 }
 0xa0e   : > { %v1213_v46 = vadd.f32 %v1303_v44, %v1212_v45  ;;  %v1423_v47 = vpop.f32.mrb[21].mxu1 }
 0xa0f   : > { %v1215_v48 = vpop.f32.mrb[22].mxu1 }
 0xa10   : > { %v1218_v49 = vadd.f32 %v1213_v46, %v1693_v5  ;;  %v1424_v50 = vpop.f32.mrb[23].mxu1 }
 0xa12   : > { %1219 = vst.msk [vmem:[%s408_s14] sm:$0xff] %vm413_vm0, %v1218_v49 }
 0xa13 PF: > { %s22_s21 = sadd.s32 1, %s1487_s21  }
 0xa14   : > { %p19_p4 = scmp.ge.s32.totalorder %s22_s21, 4  }
 0xa16   :  { %21 = sbr.rel (!%p19_p4) target bundleno = 1 (0x1), region = 98 }

// kernel: transformer_forward.2
= control target key start
LH: loop header
LB: loop body
LE: loop exit
PB: predicated region body
PF: predicated region fallthrough
CT: control target
= control target key end

     0   :  { %s1570_s21 = smov 0   ;;  %s1744_s0 = inlined_call_operand.vmem [shape: f32[16,32], index: 0, kind: input, shape index: {}, may-alias: {0,12}]   ;;  %s1745_s1 = inlined_call_operand.vmem [shape: f32[1,32], index: 1, kind: input, shape index: {}]   ;;  %s1746_s2 = inlined_call_operand.vmem [shape: f32[1,32], index: 2, kind: input, shape index: {}]   ;;  %s1747_s3 = inlined_call_operand.vmem [shape: bf16[32,96], index: 3, kind: input, shape index: {}]   ;;  %s1748_s4 = inlined_call_operand.vmem [shape: bf16[32,32], index: 4, kind: input, shape index: {}]   ;;  %s1749_s5 = inlined_call_operand.vmem [shape: f32[1,32], index: 5, kind: input, shape index: {}]   ;;  %s1750_s6 = inlined_call_operand.vmem [shape: f32[1,32], index: 6, kind: input, shape index: {}]   ;;  %s1751_s7 = inlined_call_operand.vmem [shape: f32[1,32], index: 7, kind: input, shape index: {}]   ;;  %s1752_s8 = inlined_call_operand.vmem [shape: bf16[32,64], index: 8, kind: input, shape index: {}]   ;;  %s1753_s9 = inlined_call_operand.vmem [shape: f32[1,64], index: 9, kind: input, shape index: {}]   ;;  %s1754_s10 = inlined_call_operand.vmem [shape: bf16[64,32], index: 10, kind: input, shape index: {}]   ;;  %s1755_s11 = inlined_call_operand.vmem [shape: f32[1,32], index: 11, kind: input, shape index: {}]   ;;  %s1756_s12 = inlined_call_operand.vmem [shape: f32[16,32], index: 12, kind: output, shape index: {}, may-alias: {0,12}]  }
   0x1 LB: > { %s1273_s22 = sadd.s32 4294967295, %s1487_s21   ;;  %p1277_p0 = scmp.ge.s32.totalorder %s1487_s21, 1  ;;  %s1487_s21 = sphi %s1570_s21, %s22_s21  }
   0x2   : > { %p361_p1 = scmp.lt.s32.totalorder %s1487_s21, 3 }
   0x4   : > { %p362_p2 = pnand %p1277_p0, %p361_p1 }
   0x5   : > { %p401_p3 = scmp.lt.s32.totalorder (!%p362_p2), %s1273_s22, 1  ;;  %vm413_vm0 = vcmask (!%p362_p2), 261120   ;;  %v1449_v7 = vld [vmem:[%s1747_s3] sm:$0xff] (!%p362_p2)   ;;  %v1489_v8 = vmov (!%p362_p2), 0.0   ;;  %vm1490_vm1 = vmmov (!%p362_p2), 0   ;;  %v1450_v9 = vld [vmem:[%s1747_s3 + $0x8] sm:$0xff] (!%p362_p2)  }
   0x6   : > { %365 = sbr.rel (%p362_p2) target bundleno = 2579 (0xa13), region = 68  ;;  %1341 = vmatprep.subr.bf16.mxu0 (!%p362_p2), %v1489_v8  ;;  %1345 = vmatprep.mubr.msk.bf16.mxu0 (!%p362_p2), %vm1490_vm1, %v1489_v8  ;;  %v1280_v14 = vld [vmem:[%s1745_s1] ss:$0 sm:$0xff] (!%p362_p2)  ;;  %s1491_s17 = smov (!%p362_p2), 120   ;;  %vm506_vm2 = vcmask (!%p362_p2), 64512   ;;  %vm570_vm3 = vcmask (!%p362_p2), 1043456  }
   0x7   : > { %1342 = vmatpush3.bf16.msra.mxu0 (!%p362_p2), %v1449_v7  ;;  %1349 = vmatprep.subr.bf16.mxu1 (!%p362_p2), %v1489_v8  ;;  %v1281_v16 = vld [vmem:[%s1746_s2] ss:$0 sm:$0xff] (!%p362_p2)  ;;  %s1492_s18 = smov (!%p362_p2), 96   ;;  %s1493_s19 = smov (!%p362_p2), 88   ;;  %vm957_vm4 = vcmask (!%p362_p2), 130048   ;;  %vm959_vm5 = vcmask (!%p362_p2), 195584  }
   0x8   : > { %1343 = vmatprep.subr.bf16.mxu0 (!%p362_p2), %v1489_v8  ;;  %1351 = vmatprep.mubr.msk.bf16.mxu1 (!%p362_p2), %vm1490_vm1, %v1489_v8  ;;  %s1494_s20 = smov (!%p362_p2), 80   ;;  %s1495_s24 = smov (!%p362_p2), 112   ;;  %vm1174_vm6 = vcmask (!%p362_p2), 523264  }
   0x9   : > { %s1496_s25 = smov (!%p362_p2), 72   ;;  %s1498_s27 = smov (!%p362_p2), 64  }
   0xa   : > { %s1499_s28 = smov (!%p362_p2), 56   ;;  %s1500_s29 = smov (!%p362_p2), 48  }
   0xb   : > { %1344 = vmatpush3.bf16.msra.mxu0 (!%p362_p2), %v1450_v9  ;;  %s1501_s30 = smov (!%p362_p2), 40   ;;  %s1502_s13 = smov (!%p362_p2), 8  }
   0xc   : > { %1355 = vmatprep.subr.bf16.mxu0 (!%p362_p2), %v1489_v8 }
   0xd   : > { %s1758_s22 = smov (!%p401_p3, %s1273_s22), 1 }
   0xe   : > { %s1278_s23 = sshll.u32 %s1758_s22, 3 }
   0xf   : > { %s404_s26 = scalar_lea.vmem %s1744_s0, %s1278_s23  ;;  %s408_s14 = scalar_lea.vmem %s1756_s12, %s1278_s23 }
  0x10   : > { %v1586_v0 = vld [vmem:[%s404_s26] sm:$0xff]  ;;  %s1497_s26 = smov 104  }
  0x11   : > { %v414_v1 = vsel %vm413_vm0, %v1586_v0, 0.0 }
  0x12   : > { %415 = vadd.xlane.f32.xlu0 %v414_v1 }
  0x9f   : > { %v416_v2 = vpop.xlane.xlu0 %415 }
  0xa0   : > { %v418_v3 = vmul.f32 0.03125, %v416_v2 }
  0xa2   : > { %v419_v4 = vsub.f32 %v1586_v0, %v418_v3 }
  0xa4   : > { %v420_v5 = vmul.f32 %v419_v4, %v419_v4 }
  0xa6   : > { %v421_v6 = vsel %vm413_vm0, %v420_v5, 0.0 }
  0xa7   : > { %422 = vadd.xlane.f32.xlu0 %v421_v6 }
 0x134   : > { %v423_v10 = vpop.xlane.xlu0 %422 }
 0x135   : > { %v424_v11 = vmul.f32 0.03125, %v423_v10 }
 0x137   : > { %v425_v12 = vadd.f32 1e-05, %v424_v11 }
 0x139   : > { %1459 = vrsqrt.f32 %v425_v12 }
 0x143   : > { %v1460_v13 = vpop.eup %1459 }
 0x144   : > { %v427_v15 = vmul.f32 %v1460_v13, %v419_v4 }
 0x146   : > { %v434_v17 = vmul.f32 %v1280_v14, %v427_v15 }
 0x148   : > { %v441_v18 = vadd.f32 %v1281_v16, %v434_v17 }
 0x14a   : > { %v442_v19 = vpack.c.bf16 %v441_v18, %v441_v18 }
 0x14c   : > { %1346 = vmatmul.mubr.msk.bf16.vlgmr.msra.gmra.mrb[0].mxu0 %vm413_vm0, %v442_v19 }
 0x14d   : > { %1357 = vmatprep.mubr.msk.bf16.mxu0 %vm1490_vm1, %v1489_v8 }
 0x21f   : > { %v496_v20 = vpop.f32.mrb[0].mxu0 }
 0x220   : > { %v1615_v21 = vpack.c.bf16 %v496_v20, %v496_v20  ;;  %v1347_v22 = vpop.f32.mrb[1].mxu0 }
 0x221   : > { %v499_v23 = vpop.f32.mrb[2].mxu0 }
 0x222   : > { %614 = vrot.lane.b32.xlu0 %v1615_v21, %s1491_s17  ;;  %504 = vrot.lane.b32.xlu1 %v1615_v21, %s1492_s18  ;;  %v1348_v24 = vpop.f32.mrb[3].mxu0  ;;  %s1503_s18 = smov 16  }
 0x226   : > { %616 = vrot.lane.b32.xlu1 %v1615_v21, %s1493_s19  ;;  %s1504_s19 = smov 24  }
 0x22a   : > { %726 = vrot.lane.b32.xlu1 %v1615_v21, %s1494_s20 }
 0x22e   : > { %724 = vrot.lane.b32.xlu1 %v1615_v21, %s1495_s24 }
 0x232   : > { %836 = vrot.lane.b32.xlu1 %v1615_v21, %s1496_s25 }
 0x236   : > { %834 = vrot.lane.b32.xlu1 %v1615_v21, %s1497_s26 }
 0x294   : > { %v505_v25 = vpop.permute.xlu1 %504  ;;  %v615_v30 = vpop.permute.xlu0 %614 }
 0x295   : > { %v511_v26 = vsel %vm506_vm2, %v505_v25, 0 }
 0x296   : > { %1350 = vmatpush3.bf16.xpose.msra.mxu1 %v511_v26 }
 0x297   : > { %1361 = vmatprep.subr.bf16.mxu1 %v1489_v8 }
 0x298   : > { %v617_v27 = vpop.permute.xlu1 %616 }
 0x299   : > { %v622_v28 = vsel %vm506_vm2, %v617_v27, 0 }
 0x29c   : > { %v727_v29 = vpop.permute.xlu1 %726 }
 0x29d   : > { %1352 = vmatmul.mubr.msk.bf16.vlgmr.msra.gmra.mrb[0].mxu1 %vm506_vm2, %v1615_v21  ;;  %v732_v32 = vsel %vm506_vm2, %v727_v29, 0 }
 0x29e   : > { %1362 = vmatpush3.bf16.xpose.msra.mxu1 %v622_v28  ;;  %1363 = vmatprep.mubr.msk.bf16.mxu1 %vm1490_vm1, %v1489_v8 }
 0x29f   : > { %1373 = vmatprep.subr.bf16.mxu1 %v1489_v8 }
 0x2a0   : > { %v725_v31 = vpop.permute.xlu1 %724 }
 0x2a4   : > { %v837_v33 = vpop.permute.xlu1 %836 }
 0x2a5   : > { %1364 = vmatmul.mubr.msk.bf16.vlgmr.msra.gmra.mrb[4].mxu1 %vm506_vm2, %v615_v30  ;;  %v842_v34 = vsel %vm506_vm2, %v837_v33, 0 }
 0x2a6   : > { %1374 = vmatpush3.bf16.xpose.msra.mxu1 %v732_v32  ;;  %1375 = vmatprep.mubr.msk.bf16.mxu1 %vm1490_vm1, %v1489_v8 }
 0x2a7   : > { %1385 = vmatprep.subr.bf16.mxu1 %v1489_v8 }
 0x2a8   : > { %v835_v35 = vpop.permute.xlu1 %834 }
 0x2ad   : > { %1376 = vmatmul.mubr.msk.bf16.vlgmr.msra.gmra.mrb[8].mxu1 %vm506_vm2, %v725_v31 }
 0x2ae   : > { %1386 = vmatpush3.bf16.xpose.msra.mxu1 %v842_v34  ;;  %1387 = vmatprep.mubr.msk.bf16.mxu1 %vm1490_vm1, %v1489_v8 }
 0x2af   : > { %1397 = vmatprep.subr.bf16.mxu1 %v1489_v8 }
 0x2b5   : > { %1388 = vmatmul.mubr.msk.bf16.vlgmr.msra.gmra.mrb[12].mxu1 %vm506_vm2, %v835_v35 }
 0x2b6   : > { %1401 = vmatprep.mubr.msk.bf16.mxu1 %vm1490_vm1, %v1489_v8 }
 0x370   : > { %v547_v36 = vpop.f32.mrb[0].mxu1 }
 0x371   : > { %v1353_v37 = vpop.f32.mrb[1].mxu1  ;;  %v553_v38 = vsel %vm506_vm2, %v547_v36, -inf }
 0x372   : > { %554 = vmax.xlane.f32.xlu1 %v553_v38  ;;  %v550_v39 = vpop.f32.mrb[2].mxu1 }
 0x373   : > { %v1354_v40 = vpop.f32.mrb[3].mxu1 }
 0x378   : > { %v658_v41 = vpop.f32.mrb[4].mxu1 }
 0x379   : > { %v1365_v42 = vpop.f32.mrb[5].mxu1  ;;  %v664_v43 = vsel %vm506_vm2, %v658_v41, -inf }
 0x37a   : > { %665 = vmax.xlane.f32.xlu0 %v664_v43  ;;  %v661_v44 = vpop.f32.mrb[6].mxu1 }
 0x37b   : > { %v1366_v45 = vpop.f32.mrb[7].mxu1 }
 0x380   : > { %v768_v46 = vpop.f32.mrb[8].mxu1 }
 0x381   : > { %v1377_v47 = vpop.f32.mrb[9].mxu1  ;;  %v774_v48 = vsel %vm506_vm2, %v768_v46, -inf }
 0x382   : > { %775 = vmax.xlane.f32.xlu1 %v774_v48  ;;  %v771_v49 = vpop.f32.mrb[10].mxu1  ;;  %v1452_v47 = vld [vmem:[%s1748_s4 + $0x8] sm:$0xff]  }
 0x383   : > { %v1378_v50 = vpop.f32.mrb[11].mxu1 }
 0x388   : > { %v878_v51 = vpop.f32.mrb[12].mxu1 }
 0x389   : > { %v1389_v52 = vpop.f32.mrb[13].mxu1  ;;  %v884_v53 = vsel %vm506_vm2, %v878_v51, -inf }
 0x38a   : > { %885 = vmax.xlane.f32.xlu0 %v884_v53  ;;  %v881_v54 = vpop.f32.mrb[14].mxu1 }
 0x38b   : > { %v1390_v55 = vpop.f32.mrb[15].mxu1 }
 0x3ff   : > { %v555_v56 = vpop.xlane.xlu1 %554 }
 0x400   : > { %v556_v57 = vsub.f32 %v547_v36, %v555_v56 }
 0x402   : > { %v557_v58 = vmul.f32 1.442695, %v556_v57 }
 0x404   : > { %1461 = vpow2.f32 %v557_v58 }
 0x407   : > { %v666_v59 = vpop.xlane.xlu0 %665 }
 0x408   : > { %v667_v60 = vsub.f32 %v658_v41, %v666_v59 }
 0x40a   : > { %v668_v61 = vmul.f32 1.442695, %v667_v60 }
 0x40c   : > { %1463 = vpow2.f32 %v668_v61 }
 0x40e   : > { %v1462_v62 = vpop.eup %1461 }
 0x40f   : > { %v559_v63 = vsel %vm506_vm2, %v1462_v62, 0.0  ;;  %v776_v9 = vpop.xlane.xlu1 %775 }
 0x410   : > { %560 = vadd.xlane.f32.xlu1 %v559_v63  ;;  %v777_v10 = vsub.f32 %v768_v46, %v776_v9  ;;  %v1451_v46 = vld [vmem:[%s1748_s4] sm:$0xff]  }
 0x411   : > { %1398 = vmatpush3.bf16.msra.mxu1 %v1451_v46  ;;  %v1293_v63 = vld [vmem:[%s1749_s5] ss:$0 sm:$0xff] }
 0x412   : > { %v778_v11 = vmul.f32 1.442695, %v777_v10  ;;  %1399 = vmatprep.subr.bf16.mxu1 %v1489_v8 }
 0x415   : > { %1400 = vmatpush3.bf16.msra.mxu1 %v1452_v47 }
 0x416   : > { %v1464_v1 = vpop.eup %1463  ;;  %1413 = vmatprep.subr.bf16.mxu1 %v1489_v8 }
 0x417   : > { %v886_v2 = vpop.xlane.xlu0 %885  ;;  %v670_v3 = vsel %vm506_vm2, %v1464_v1, 0.0 }
 0x418   : > { %v887_v4 = vsub.f32 %v878_v51, %v886_v2  ;;  %671 = vadd.xlane.f32.xlu0 %v670_v3 }
 0x41a   : > { %v888_v5 = vmul.f32 1.442695, %v887_v4 }
 0x41c   : > { %1465 = vpow2.f32 %v888_v5 }
 0x41d   : > { %1467 = vpow2.f32 %v778_v11 }
 0x421   : > { %565 = vrot.lane.b32.xlu1 %v1615_v21, %s1498_s27 }
 0x426   : > { %v1466_v6 = vpop.eup %1465 }
 0x427   : > { %v890_v7 = vsel %vm506_vm2, %v1466_v6, 0.0  ;;  %v1468_v12 = vpop.eup %1467 }
 0x428   : > { %891 = vadd.xlane.f32.xlu0 %v890_v7  ;;  %v780_v13 = vsel %vm506_vm2, %v1468_v12, 0.0 }
 0x43e   : > { %676 = vrot.lane.b32.xlu0 %v1615_v21, %s1499_s28 }
 0x445   : > { %781 = vadd.xlane.f32.xlu1 %v780_v13 }
 0x456   : > { %786 = vrot.lane.b32.xlu1 %v1615_v21, %s1500_s29 }
 0x45a   : > { %896 = vrot.lane.b32.xlu1 %v1615_v21, %s1501_s30 }
 0x49d   : > { %v561_v14 = vpop.xlane.xlu1 %560 }
 0x49e   : > { %1469 = vrcp.f32 %v561_v14  ;;  %v1453_v14 = vld [vmem:[%s1752_s8] sm:$0xff]  }
 0x4a1   : > { %v566_v15 = vpop.permute.xlu1 %565 }
 0x4a2   : > { %v572_v16 = vsel %vm570_vm3, %v566_v15, 0 }
 0x4a3   : > { %1356 = vmatpush3.bf16.msra.mxu0 %v572_v16 }
 0x4a4   : > { %1367 = vmatprep.subr.bf16.mxu0 %v1489_v8 }
 0x4a5   : > { %v672_v18 = vpop.xlane.xlu0 %671 }
 0x4a6   : > { %1471 = vrcp.f32 %v672_v18 }
 0x4a8   : > { %v1470_v17 = vpop.eup %1469 }
 0x4a9   : > { %v563_v19 = vmul.f32 %v1470_v17, %v1462_v62 }
 0x4ab   : > { %v564_v20 = vpack.c.bf16 %v563_v19, %v563_v19  ;;  %v1297_v19 = vld [vmem:[%s1750_s6] ss:$0 sm:$0xff] }
 0x4ad   : > { %1358 = vmatmul.mubr.msk.bf16.vlgmr.msra.gmra.mrb[4].mxu0 %vm506_vm2, %v564_v20 }
 0x4ae   : > { %1369 = vmatprep.mubr.msk.bf16.mxu0 %vm1490_vm1, %v1489_v8 }
 0x4b0   : > { %v1472_v21 = vpop.eup %1471 }
 0x4b1   : > { %v674_v23 = vmul.f32 %v1472_v21, %v1464_v1  ;;  %v1298_v21 = vld [vmem:[%s1751_s7] ss:$0 sm:$0xff] }
 0x4b3   : > { %v675_v26 = vpack.c.bf16 %v674_v23, %v674_v23 }
 0x4b5   : > { %v892_v22 = vpop.xlane.xlu0 %891 }
 0x4b9   : > { %v677_v24 = vpop.permute.xlu0 %676 }
 0x4ba   : > { %v682_v25 = vsel %vm570_vm3, %v677_v24, 0 }
 0x4bb   : > { %1368 = vmatpush3.bf16.msra.mxu0 %v682_v25  ;;  %v1455_v25 = vld [vmem:[%s1754_s10] sm:$0xff]  }
 0x4bc   : > { %1379 = vmatprep.subr.bf16.mxu0 %v1489_v8 }
 0x4be   : > { %1370 = vmatmul.mubr.msk.bf16.vlgmr.msra.gmra.mrb[8].mxu0 %vm506_vm2, %v675_v26  ;;  %v1456_v26 = vld [vmem:[%s1754_s10 + $0x8] sm:$0xff]  }
 0x4bf   : > { %1381 = vmatprep.mubr.msk.bf16.mxu0 %vm1490_vm1, %v1489_v8 }
 0x4d2   : > { %v782_v27 = vpop.xlane.xlu1 %781 }
 0x4d3   : > { %1473 = vrcp.f32 %v782_v27  ;;  %v1457_v27 = vld [vmem:[%s1754_s10 + $0x10] sm:$0xff]  }
 0x4d4   : > { %1475 = vrcp.f32 %v892_v22 }
 0x4d6   : > { %v787_v28 = vpop.permute.xlu1 %786 }
 0x4d7   : > { %v792_v29 = vsel %vm570_vm3, %v787_v28, 0  ;;  %v1458_v28 = vld [vmem:[%s1754_s10 + $0x18] sm:$0xff]  }
 0x4d8   : > { %1380 = vmatpush3.bf16.msra.mxu0 %v792_v29  ;;  %v1299_v29 = vld [vmem:[%s1753_s9] ss:$0 sm:$0xff] }
 0x4d9   : > { %1391 = vmatprep.subr.bf16.mxu0 %v1489_v8 }
 0x4da   : > { %v897_v32 = vpop.permute.xlu1 %896 }
 0x4db   : > { %v902_v35 = vsel %vm570_vm3, %v897_v32, 0 }
 0x4dd   : > { %v1474_v30 = vpop.eup %1473 }
 0x4de   : > { %v784_v31 = vmul.f32 %v1474_v30, %v1468_v12  ;;  %v1476_v34 = vpop.eup %1475 }
 0x4df   : > { %v894_v36 = vmul.f32 %v1476_v34, %v1466_v6 }
 0x4e0   : > { %v785_v33 = vpack.c.bf16 %v784_v31, %v784_v31 }
 0x4e1   : > { %v895_v37 = vpack.c.bf16 %v894_v36, %v894_v36 }
 0x4e2   : > { %1382 = vmatmul.mubr.msk.bf16.vlgmr.msra.gmra.mrb[12].mxu0 %vm506_vm2, %v785_v33 }
 0x4e3   : > { %1392 = vmatpush3.bf16.msra.mxu0 %v902_v35  ;;  %1393 = vmatprep.mubr.msk.bf16.mxu0 %vm1490_vm1, %v1489_v8 }
 0x4e4   : > { %1405 = vmatprep.subr.bf16.mxu0 %v1489_v8 }
 0x4ea   : > { %1394 = vmatmul.mubr.msk.bf16.vlgmr.msra.gmra.mrb[16].mxu0 %vm506_vm2, %v895_v37 }
 0x4eb   : > { %1409 = vmatprep.mubr.msk.bf16.mxu0 %vm1490_vm1, %v1489_v8  ;;  %1406 = vmatpush3.bf16.msra.mxu0 %v1453_v14 }
 0x4ec   : > { %1407 = vmatprep.subr.bf16.mxu0 %v1489_v8 }
 0x580   : > { %v608_v38 = vpop.f32.mrb[4].mxu0 }
 0x581   : > { %v1359_v39 = vpop.f32.mrb[5].mxu0 }
 0x582   : > { %v611_v40 = vpop.f32.mrb[6].mxu0 }
 0x583   : > { %v1360_v41 = vpop.f32.mrb[7].mxu0 }
 0x591   : > { %v718_v42 = vpop.f32.mrb[8].mxu0 }
 0x592   : > { %945 = vrot.lane.b32.xlu0 %v718_v42, %s1502_s13  ;;  %v1371_v43 = vpop.f32.mrb[9].mxu0 }
 0x593   : > { %v721_v44 = vpop.f32.mrb[10].mxu0 }
 0x594   : > { %v1372_v45 = vpop.f32.mrb[11].mxu0  ;;  %v1303_v44 = vld [vmem:[%s1755_s11] ss:$0 sm:$0xff] }
 0x5b5   : > { %v828_v48 = vpop.f32.mrb[12].mxu0 }
 0x5b6   : > { %949 = vrot.lane.b32.xlu1 %v828_v48, %s1503_s18  ;;  %v1383_v49 = vpop.f32.mrb[13].mxu0 }
 0x5b7   : > { %v831_v50 = vpop.f32.mrb[14].mxu0 }
 0x5b8   : > { %v1384_v51 = vpop.f32.mrb[15].mxu0 }
 0x5bd   : > { %v938_v52 = vpop.f32.mrb[16].mxu0 }
 0x5be   : > { %953 = vrot.lane.b32.xlu0 %v938_v52, %s1504_s19  ;;  %v1395_v53 = vpop.f32.mrb[17].mxu0 }
 0x5bf   : > { %v941_v54 = vpop.f32.mrb[18].mxu0 }
 0x5c0   : > { %v1396_v55 = vpop.f32.mrb[19].mxu0 }
 0x604   : > { %v946_v56 = vpop.permute.xlu0 %945 }
 0x605   : > { %v956_v58 = vsel %vm506_vm2, %v608_v38, %v946_v56 }
 0x628   : > { %v950_v57 = vpop.permute.xlu1 %949 }
 0x629   : > { %v958_v59 = vsel %vm957_vm4, %v956_v58, %v950_v57 }
 0x630   : > { %v954_v60 = vpop.permute.xlu0 %953 }
 0x631   : > { %v960_v61 = vsel %vm959_vm5, %v958_v59, %v954_v60 }
 0x632   : > { %v961_v62 = vpack.c.bf16 %v960_v61, %v960_v61 }
 0x634   : > { %1402 = vmatmul.mubr.msk.bf16.vlgmr.msra.gmra.mrb[16].mxu1 %vm413_vm0, %v961_v62 }
 0x635   : > { %1421 = vmatprep.mubr.msk.bf16.mxu1 %vm1490_vm1, %v1489_v8  ;;  %1414 = vmatpush3.bf16.msra.mxu1 %v1455_v25 }
 0x636   : > { %1415 = vmatprep.subr.bf16.mxu1 %v1489_v8 }
 0x639   : > { %1416 = vmatpush3.bf16.msra.mxu1 %v1456_v26 }
 0x63a   : > { %1417 = vmatprep.subr.bf16.mxu1 %v1489_v8 }
 0x63d   : > { %1418 = vmatpush3.bf16.msra.mxu1 %v1457_v27 }
 0x63e   : > { %1419 = vmatprep.subr.bf16.mxu1 %v1489_v8 }
 0x641   : > { %1420 = vmatpush3.bf16.msra.mxu1 %v1458_v28 }
 0x707   : > { %v1022_v1 = vpop.f32.mrb[16].mxu1 }
 0x708   : > { %v1023_v2 = vadd.f32 %v1293_v63, %v1022_v1  ;;  %v1403_v3 = vpop.f32.mrb[17].mxu1 }
 0x709   : > { %v1025_v4 = vpop.f32.mrb[18].mxu1 }
 0x70a   : > { %v1693_v5 = vadd.f32 %v1023_v2, %v1586_v0  ;;  %v1404_v6 = vpop.f32.mrb[19].mxu1  ;;  %v1454_v0 = vld [vmem:[%s1752_s8 + $0x8] sm:$0xff]  }
 0x70b   : > { %1408 = vmatpush3.bf16.msra.mxu0 %v1454_v0 }
 0x70c   : > { %v1031_v7 = vsel %vm413_vm0, %v1693_v5, 0.0 }
 0x70d   : > { %1032 = vadd.xlane.f32.xlu1 %v1031_v7 }
 0x79a   : > { %v1033_v9 = vpop.xlane.xlu1 %1032 }
 0x79b   : > { %v1034_v10 = vmul.f32 0.03125, %v1033_v9 }
 0x79d   : > { %v1035_v11 = vsub.f32 %v1693_v5, %v1034_v10 }
 0x79f   : > { %v1036_v12 = vmul.f32 %v1035_v11, %v1035_v11 }
 0x7a1   : > { %v1037_v13 = vsel %vm413_vm0, %v1036_v12, 0.0 }
 0x7a2   : > { %1038 = vadd.xlane.f32.xlu0 %v1037_v13 }
 0x82f   : > { %v1039_v15 = vpop.xlane.xlu0 %1038 }
 0x830   : > { %v1040_v16 = vmul.f32 0.03125, %v1039_v15 }
 0x832   : > { %v1041_v17 = vadd.f32 1e-05, %v1040_v16 }
 0x834   : > { %1477 = vrsqrt.f32 %v1041_v17 }
 0x83e   : > { %v1478_v18 = vpop.eup %1477 }
 0x83f   : > { %v1043_v20 = vmul.f32 %v1478_v18, %v1035_v11 }
 0x841   : > { %v1050_v22 = vmul.f32 %v1297_v19, %v1043_v20 }
 0x843   : > { %v1057_v23 = vadd.f32 %v1298_v21, %v1050_v22 }
 0x845   : > { %v1058_v24 = vpack.c.bf16 %v1057_v23, %v1057_v23 }
 0x847   : > { %1410 = vmatmul.mubr.msk.bf16.vlgmr.msra.gmra.mrb[20].mxu0 %vm413_vm0, %v1058_v24 }
 0x91a   : > { %v1119_v30 = vpop.f32.mrb[20].mxu0 }
 0x91b   : > { %v1120_v31 = vadd.f32 %v1299_v29, %v1119_v30  ;;  %v1411_v32 = vpop.f32.mrb[21].mxu0 }
 0x91c   : > { %v1122_v33 = vpop.f32.mrb[22].mxu0 }
 0x91d   : > { %v1125_v34 = vmul.f32 %v1120_v31, %v1120_v31  ;;  %v1412_v35 = vpop.f32.mrb[23].mxu0 }
 0x91f   : > { %v1126_v36 = vmul.f32 %v1125_v34, %v1120_v31 }
 0x921   : > { %v1127_v37 = vmul.f32 0.044715, %v1126_v36 }
 0x923   : > { %v1128_v38 = vadd.f32 %v1127_v37, %v1120_v31 }
 0x925   : > { %v1129_v8 = vmul.f32 0.7978846, %v1128_v38 }
 0x927   : > { %1479 = vtanh.f32 %v1129_v8 }
 0x931   : > { %v1480_v39 = vpop.eup %1479 }
 0x932   : > { %v1131_v40 = vadd.f32 1.0, %v1480_v39 }
 0x934   : > { %v1132_v41 = vmul.f32 0.5, %v1131_v40 }
 0x936   : > { %v1133_v42 = vmul.f32 %v1132_v41, %v1120_v31 }
 0x938   : > { %v1134_v43 = vpack.c.bf16 %v1133_v42, %v1133_v42 }
 0x93a   : > { %1422 = vmatmul.mubr.msk.bf16.vlgmr.msra.gmra.mrb[20].mxu1 %vm1174_vm6, %v1134_v43 }
 0xa0d   : > { %v1212_v45 = vpop.f32.mrb[20].mxu1 }
 0xa0e   : > { %v1213_v46 = vadd.f32 %v1303_v44, %v1212_v45  ;;  %v1423_v47 = vpop.f32.mrb[21].mxu1 }
 0xa0f   : > { %v1215_v48 = vpop.f32.mrb[22].mxu1 }
 0xa10   : > { %v1218_v49 = vadd.f32 %v1213_v46, %v1693_v5  ;;  %v1424_v50 = vpop.f32.mrb[23].mxu1 }
 0xa12   : > { %1219 = vst.msk [vmem:[%s408_s14] sm:$0xff] %vm413_vm0, %v1218_v49 }
 0xa13 PF: > { %s22_s21 = sadd.s32 1, %s1487_s21  }
 0xa14   : > { %p19_p4 = scmp.ge.s32.totalorder %s22_s21, 4  }
 0xa16   :  { %21 = sbr.rel (!%p19_p4) target bundleno = 1 (0x1), region = 98 }

</bundles_post_ra>
